<compile_context>
chip_gen: v5e
topology: v5e:2x2
jax: 0.10.0
libtpu: 0.0.40
codegen_flags: <defaults>
</compile_context>

<pallas_src>
import functools

import numpy as np
import jax
import jax.numpy as jnp
from jax.experimental import pallas as pl
from jax.experimental.pallas import tpu as pltpu


# ---------------------------------------------------------------------------
# Deterministic parameter initialization (matches UpsamplingConvTranspose2d)
# ---------------------------------------------------------------------------
def _mirror4(q):
    """Build a symmetric 2N x 2N kernel from its top-left N x N quadrant."""
    q = np.asarray(q, np.float32)
    top = np.concatenate([q, q[:, ::-1]], axis=1)
    return np.concatenate([top, top[::-1]], axis=0)


_KERNEL_BILINEAR = _mirror4(
    [[0.0625, 0.1875],
     [0.1875, 0.5625]]
)  # 4x4

_KERNEL_BICUBIC = _mirror4(
    [[0.0012359619, 0.0037078857, -0.0092010498, -0.0308990479],
     [0.0037078857, 0.0111236572, -0.0276031494, -0.0926971436],
     [-0.0092010498, -0.0276031494, 0.0684967041, 0.2300262451],
     [-0.0308990479, -0.0926971436, 0.2300262451, 0.7724761963]]
)  # 8x8


def make_upsampling_weight(upsampling_kernel_size: int) -> jnp.ndarray:
    """Same init as UpsamplingConvTranspose2d.initialize_parameters -> (K, K)."""
    K = upsampling_kernel_size
    assert K >= 4 and K % 2 == 0
    base = _KERNEL_BILINEAR if K < 8 else _KERNEL_BICUBIC
    pad = (K - base.shape[0]) // 2
    w = np.pad(base, ((pad, pad), (pad, pad)), mode="constant")
    return jnp.asarray(w, jnp.float32)


def _factor_weight(weight, K):
    """Try to factor the (K, K) weight as outer(u, v) (true for the module's
    bilinear / bicubic initialization). Returns (taps, separable)."""
    try:
        w_np = np.asarray(jax.device_get(weight), np.float64).reshape(K, K)
    except Exception:  # traced / non-concrete weight -> general 2-D kernel
        return jnp.asarray(weight, jnp.float32).reshape(-1), False
    U, S, Vt = np.linalg.svd(w_np)
    if S[0] > 0.0 and np.all(S[1:] <= 1e-6 * S[0]):
        u = (U[:, 0] * S[0]).astype(np.float32)
        v = Vt[0].astype(np.float32)
        return jnp.asarray(np.concatenate([u, v])), True
    return jnp.asarray(w_np.reshape(-1).astype(np.float32)), False


# ---------------------------------------------------------------------------
# In-kernel helpers
# ---------------------------------------------------------------------------
def _phase_offsets(crop):
    # For output row/col parity a in {0,1}: weight-tap parity r and base offset
    # o such that cropped_out[2u + a] pulls padded-input rows u + (o - d) with
    # weight index (2d + r), d in [0, K // 2).
    return [((a + crop) % 2, (a + crop) // 2) for a in range(2)]


def _fill_replicate_pad(pad_ref, x, K):
    """Edge-replicate pad of x into VMEM scratch pad_ref (no concat temps).

    x: (H, W, L) value; pad_ref: (H + K, W + K, L) scratch ref.
    """
    H, W, L = x.shape
    p = K // 2
    Hp, Wp = H + K, W + K
    pad_ref[p:p + H, p:p + W, :] = x
    pad_ref[0:p, p:p + W, :] = jnp.broadcast_to(x[0:1], (p, W, L))
    pad_ref[p + H:Hp, p:p + W, :] = jnp.broadcast_to(x[H - 1:H], (p, W, L))
    left = pad_ref[:, p:p + 1, :]
    pad_ref[:, 0:p, :] = jnp.broadcast_to(left, (Hp, p, L))
    right = pad_ref[:, p + W - 1:p + W, :]
    pad_ref[:, p + W:Wp, :] = jnp.broadcast_to(right, (Hp, p, L))


def _replicate_pad2d(x, pad):
    """Concat-based replicate pad (compat path only)."""
    top = jnp.broadcast_to(x[0:1], (pad,) + x.shape[1:])
    bot = jnp.broadcast_to(x[-1:], (pad,) + x.shape[1:])
    x = jnp.concatenate([top, x, bot], axis=0)
    left = jnp.broadcast_to(x[:, 0:1], (x.shape[0], pad, x.shape[2]))
    right = jnp.broadcast_to(x[:, -1:], (x.shape[0], pad, x.shape[2]))
    return jnp.concatenate([left, x, right], axis=1)


def _store_interleaved(o_ref, p, Ho, Wo, out_h, out_wp):
    """Store the 4 phase planes p[a][b] (each (Ho, Wo, cbt), with
    p[a][b][u, v] == z[2u + a, 2v + b]) into o_ref of shape
    (out_h, out_wp, 2, cbt).  Row interleave = leading-dim stack + reshape
    (layout-safe); column parity is a factored output axis, so the wrapper
    merge is a free bitcast reshape (no extra HBM pass)."""
    for b in range(2):
        zb = jnp.concatenate([p[0][b][:, None], p[1][b][:, None]], axis=1)
        zb = zb.reshape(2 * Ho, Wo, zb.shape[-1])
        o_ref[:, :, b, :] = zb[:out_h, :out_wp, :]


# ---------------------------------------------------------------------------
# Pallas kernels: polyphase stride-2 transposed conv (channels on lanes)
# ---------------------------------------------------------------------------
def _upsample_sep_kernel(taps_ref, x_ref, o_ref, pad_ref, *,
                         K, crop, H, W, out_h, out_wp):
    """Separable weight w = outer(u, v); taps_ref = concat([u, v]) in SMEM."""
    Kh = K // 2
    Ho, Wo = H + 1, W + 1
    ph = _phase_offsets(crop)

    _fill_replicate_pad(pad_ref, x_ref[...], K)      # (H + K, W + K, cbt)

    # Column (W) pass first, de-duplicated sublane slices: only K//2 + 1
    # misaligned W slices of the padded plane (vs 2*2*(K//2) before).
    shifts = sorted({ow - e for (_, ow) in ph for e in range(Kh)})
    t = [None, None]                                  # per column phase b
    for sw in shifts:
        xs = pad_ref[:, sw:sw + Wo, :]                # (Hp, Wo, cbt)
        for b, (rw, ow) in enumerate(ph):
            e = ow - sw
            if 0 <= e < Kh:
                term = taps_ref[K + 2 * e + rw] * xs
                t[b] = term if t[b] is None else t[b] + term

    # Row (H) pass: leading-dim slices are cheap (no relayout).
    p = [[None, None], [None, None]]
    for a, (rh, oh) in enumerate(ph):
        for d in range(Kh):
            c = taps_ref[2 * d + rh]
            for b in range(2):
                term = c * t[b][oh - d: oh - d + Ho]
                p[a][b] = term if p[a][b] is None else p[a][b] + term

    _store_interleaved(o_ref, p, Ho, Wo, out_h, out_wp)


def _upsample_gen_kernel(w_ref, x_ref, o_ref, pad_ref, *,
                         K, crop, H, W, out_h, out_wp):
    """Arbitrary (K, K) weight (flattened in SMEM).  Expensive (sublane) W
    slices are outermost and de-duplicated; H shifts are cheap leading-dim
    slices, which also bounds live temporaries."""
    Kh = K // 2
    Ho, Wo = H + 1, W + 1
    ph = _phase_offsets(crop)

    _fill_replicate_pad(pad_ref, x_ref[...], K)

    shifts = sorted({ow - e for (_, ow) in ph for e in range(Kh)})
    acc = [[None, None], [None, None]]
    for sw in shifts:
        xs = pad_ref[:, sw:sw + Wo, :]                # (Hp, Wo, cbt)
        for sh in shifts:
            xr = xs[sh:sh + Ho]                       # (Ho, Wo, cbt) - cheap
            for a, (rh, oh) in enumerate(ph):
                d = oh - sh
                if not (0 <= d < Kh):
                    continue
                for b, (rw, ow) in enumerate(ph):
                    e = ow - sw
                    if not (0 <= e < Kh):
                        continue
                    term = w_ref[(2 * d + rh) * K + (2 * e + rw)] * xr
                    acc[a][b] = term if acc[a][b] is None else acc[a][b] + term

    _store_interleaved(o_ref, acc, Ho, Wo, out_h, out_wp)


# --- compat kernels (previously validated design; safety-net fallback) ------
def _upsample_sep_kernel_compat(taps_ref, x_ref, o_ref, *, K, crop, H, W):
    pad = K // 2
    Ho, Wo = H + 1, W + 1
    ph = _phase_offsets(crop)
    xp = _replicate_pad2d(x_ref[...], pad)
    t = []
    for (rh, oh) in ph:
        acc = None
        for d in range(K // 2):
            term = taps_ref[2 * d + rh] * xp[oh - d: oh - d + Ho]
            acc = term if acc is None else acc + term
        t.append(acc)
    for a in range(2):
        for b, (rw, ow) in enumerate(ph):
            acc = None
            for e in range(K // 2):
                term = taps_ref[K + 2 * e + rw] * t[a][:, ow - e: ow - e + Wo, :]
                acc = term if acc is None else acc + term
            o_ref[a, b] = acc


def _upsample_gen_kernel_compat(w_ref, x_ref, o_ref, *, K, crop, H, W):
    pad = K // 2
    Ho, Wo = H + 1, W + 1
    Kh = K // 2
    ph = _phase_offsets(crop)
    xp = _replicate_pad2d(x_ref[...], pad)
    shift_vals = sorted({oh - d for (_, oh) in ph for d in range(Kh)})
    acc = [[None, None], [None, None]]
    for sh in shift_vals:
        xr = xp[sh: sh + Ho]
        for sw in shift_vals:
            xs = xr[:, sw: sw + Wo, :]
            for a, (rh, oh) in enumerate(ph):
                d = oh - sh
                if d < 0 or d >= Kh:
                    continue
                for b, (rw, ow) in enumerate(ph):
                    e = ow - sw
                    if e < 0 or e >= Kh:
                        continue
                    term = w_ref[(2 * d + rh) * K + (2 * e + rw)] * xs
                    acc[a][b] = term if acc[a][b] is None else acc[a][b] + term
    for a in range(2):
        for b in range(2):
            o_ref[a, b] = acc[a][b]


# ---------------------------------------------------------------------------
# Block plan (generation-aware VMEM budgeting)
# ---------------------------------------------------------------------------
def _vmem_capacity_bytes():
    try:
        return int(pltpu.get_tpu_info().vmem_capacity_bytes)
    except Exception:
        return 64 << 20  # conservative: v7x physical VMEM


def _block_plan(H, W, K, CB, out_h, out_wp):
    """Pick the CB (lane) tile and a VMEM budget hint."""
    Hp, Wp = H + K, W + K
    Ho, Wo = H + 1, W + 1
    # f32 elements per lane of a CB tile (upper bound over both kernel paths):
    per_lane_elems = (
        2 * H * W                    # input block, double buffered
        + 2 * out_h * out_wp * 8     # output block ((2, cbt) tiles pad to 8 sublanes), x2 buffers
        + 2 * Hp * Wp                # replicate-pad scratch (+ compat concat temps)
        + 3 * Hp * Wo                # W-pass slice + column-phase accumulators
        + 8 * Ho * Wo                # row-phase accumulators / interleave temporaries
    )
    per_lane = 4 * per_lane_elems
    usable = max(24 << 20, _vmem_capacity_bytes() - (16 << 20))
    cbt = CB
    if CB % 128 == 0:
        if CB * per_lane > usable:
            cbt = max(128, (usable // per_lane) // 128 * 128)
            while cbt > 128 and CB % cbt:
                cbt -= 128
        elif CB >= 256:
            # Guarantee >= 2 grid steps: both v7x TensorCores get work and the
            # pipeline can overlap DMA with compute.
            half = (CB // 2) // 128 * 128
            cbt = half if (half >= 128 and CB % half == 0) else 128
    # TODO(synk): for CB % 128 != 0 with very large planes, tile along W with a
    # K-pixel halo instead of keeping the whole plane resident (v7x, 64 MiB).
    vmem_limit = int(min(usable, max(32 << 20, int(1.25 * cbt * per_lane))))
    return cbt, vmem_limit


# ---------------------------------------------------------------------------
# Wrapper: UpsamplingConvTranspose2d.forward in channels-last plane layout
# ---------------------------------------------------------------------------
def _upsample_2x_fused(x_hwc, taps, K, separable, out_h, out_w):
    """(H, W, CB) f32 -> (out_h, out_w, CB) f32; fused phase interleave."""
    H, W, CB = x_hwc.shape
    crop = (3 * K - 2) // 2
    out_wp = (out_w + 1) // 2          # column pairs stored by the kernel
    cbt, vmem_limit = _block_plan(H, W, K, CB, out_h, out_wp)

    body = _upsample_sep_kernel if separable else _upsample_gen_kernel
    kernel = functools.partial(body, K=K, crop=crop, H=H, W=W,
                               out_h=out_h, out_wp=out_wp)

    out = pl.pallas_call(
        kernel,
        out_shape=jax.ShapeDtypeStruct((out_h, out_wp, 2, CB), jnp.float32),
        grid_spec=pltpu.PrefetchScalarGridSpec(
            num_scalar_prefetch=1,               # taps -> SMEM scalars
            grid=(CB // cbt,),
            in_specs=[pl.BlockSpec((H, W, cbt), lambda i, _: (0, 0, i))],
            out_specs=pl.BlockSpec((out_h, out_wp, 2, cbt),
                                   lambda i, _: (0, 0, 0, i)),
            scratch_shapes=[pltpu.VMEM((H + K, W + K, cbt), jnp.float32)],
        ),
        compiler_params=pltpu.CompilerParams(
            dimension_semantics=("parallel",),
            vmem_limit_bytes=vmem_limit,
        ),
    )(taps, x_hwc.astype(jnp.float32))

    # (out_h, out_wp, 2, CB) -> (out_h, 2*out_wp, CB) is a bitcast reshape
    # (column-pair axis sits immediately left of the parity axis): no HBM pass.
    y = out.reshape(out_h, 2 * out_wp, CB)
    if out_w != 2 * out_wp:
        y = y[:, :out_w, :]
    return y


def _upsample_2x_compat(x_hwc, taps, K, separable, out_h, out_w):
    """Previously validated phase-major layout + XLA interleave (fallback)."""
    H, W, CB = x_hwc.shape
    crop = (3 * K - 2) // 2
    Ho, Wo = H + 1, W + 1
    cbt, vmem_limit = _block_plan(H, W, K, CB, out_h, (out_w + 1) // 2)

    body = _upsample_sep_kernel_compat if separable else _upsample_gen_kernel_compat
    kernel = functools.partial(body, K=K, crop=crop, H=H, W=W)

    phases = pl.pallas_call(
        kernel,
        out_shape=jax.ShapeDtypeStruct((2, 2, Ho, Wo, CB), jnp.float32),
        grid_spec=pltpu.PrefetchScalarGridSpec(
            num_scalar_prefetch=1,
            grid=(CB // cbt,),
            in_specs=[pl.BlockSpec((H, W, cbt), lambda i, _: (0, 0, i))],
            out_specs=pl.BlockSpec((2, 2, Ho, Wo, cbt),
                                   lambda i, _: (0, 0, 0, 0, i)),
        ),
        compiler_params=pltpu.CompilerParams(
            dimension_semantics=("parallel",),
            vmem_limit_bytes=vmem_limit,
        ),
    )(taps, x_hwc.astype(jnp.float32))

    z = jnp.transpose(phases, (2, 0, 3, 1, 4)).reshape(2 * Ho, 2 * Wo, CB)
    return z[:out_h, :out_w, :]


_FUSED_OUTPUT = True   # cleared if the fused-interleave store fails to lower


def upsample_2x(x_hwc, taps, K, separable, out_h, out_w):
    """Equivalent to: replicate-pad K//2, conv_transpose2d(stride=2,
    output_padding=1) with a single-channel kernel, crop (3K-2)//2, then crop
    to (out_h, out_w).  Non-jit safety net: falls back to the validated
    phase-major layout if the fused path fails to lower on this toolchain."""
    global _FUSED_OUTPUT
    if _FUSED_OUTPUT:
        try:
            y = _upsample_2x_fused(x_hwc, taps, K, separable, out_h, out_w)
            return jax.block_until_ready(y)
        except Exception:
            _FUSED_OUTPUT = False
    return _upsample_2x_compat(x_hwc, taps, K, separable, out_h, out_w)


# ---------------------------------------------------------------------------
# Upsampling.forward (highest_flag = 1, the default)
# ---------------------------------------------------------------------------
def _to_planes(t):
    """(B, C, H, W) -> (H, W, C*B) with lane order (c, b)."""
    B, C, H, W = t.shape
    return jnp.transpose(t, (2, 3, 1, 0)).reshape(H, W, C * B).astype(jnp.float32)


def upsampling_forward(decoder_side_latent, weight, K, force_general=False):
    """latents[i]: (B, C_i, H_i, W_i), coarsest first -> (B, sum C_i, H, W)."""
    B = decoder_side_latent[0].shape[0]
    if force_general:
        taps, separable = jnp.asarray(weight, jnp.float32).reshape(-1), False
    else:
        taps, separable = _factor_weight(weight, K)

    ups = _to_planes(decoder_side_latent[0])
    for target in decoder_side_latent[1:]:
        th, tw = int(target.shape[-2]), int(target.shape[-1])
        y = upsample_2x(ups, taps, K, separable, th, tw)   # (th, tw, CB)
        # TODO(synk): fuse this concatenate into the pallas output via
        # input_output_aliases (write y directly into the channel slice of the
        # next level's buffer) to save one HBM pass per level.
        ups = jnp.concatenate([_to_planes(target), y], axis=-1)

    H, W, CB = ups.shape
    C = CB // B
    # highest_flag == 1: no final extra upsampling of the dense representation.
    return jnp.transpose(ups.reshape(H, W, C, B), (3, 2, 0, 1))


# ---------------------------------------------------------------------------
# Pure-numpy reference (direct scatter form of conv_transpose2d) for checking
# ---------------------------------------------------------------------------
def _ref_conv_transpose_1ch(xp, w):
    # stride=2, padding=0, output_padding=1, single in/out channel
    N, Hp, Wp = xp.shape
    K = w.shape[0]
    Ho = (Hp - 1) * 2 + K + 1
    Wo = (Wp - 1) * 2 + K + 1
    y = np.zeros((N, Ho, Wo), np.float32)
    for i in range(Hp):
        for j in range(Wp):
            y[:, 2 * i:2 * i + K, 2 * j:2 * j + K] += xp[:, i:i + 1, j:j + 1] * w[None]
    return y


def _ref_upsampling_forward(latents, weight, K):
    weight = np.asarray(weight, np.float32)
    pad = K // 2
    crop = (3 * K - 2) // 2
    up = np.asarray(latents[0], np.float32)
    for target in latents[1:]:
        target = np.asarray(target, np.float32)
        B, C, H, W = up.shape
        x = up.reshape(B * C, H, W)
        xp = np.pad(x, ((0, 0), (pad, pad), (pad, pad)), mode="edge")
        y = _ref_conv_transpose_1ch(xp, weight)
        y = y[:, crop:y.shape[1] - crop, crop:y.shape[2] - crop]
        th, tw = target.shape[-2], target.shape[-1]
        y = y[:, :th, :tw].reshape(B, C, th, tw)
        up = np.concatenate([target, y], axis=1)
    return up


if __name__ == "__main__":
    upsampling_kernel_size = 8          # >= 8 -> bicubic init (static kernel)
    B = 2
    weight = make_upsampling_weight(upsampling_kernel_size)

    key = jax.random.PRNGKey(0)
    k0, k1, k2 = jax.random.split(key, 3)
    # Hierarchical latents (coarsest first): (B, C_i, H/2^i, W/2^i)
    decoder_side_latent = [
        jax.random.normal(k0, (B, 1, 4, 4), jnp.float32),
        jax.random.normal(k1, (B, 2, 8, 8), jnp.float32),
        jax.random.normal(k2, (B, 3, 16, 16), jnp.float32),
    ]

    ref = _ref_upsampling_forward(decoder_side_latent, weight,
                                  upsampling_kernel_size)

    # Fast path: separable (rank-1) kernel, as produced by the default init.
    out = upsampling_forward(decoder_side_latent, weight, upsampling_kernel_size)
    out = jax.block_until_ready(out)
    assert out.shape == (B, 6, 16, 16), out.shape
    np.testing.assert_allclose(np.asarray(out), ref, rtol=1e-4, atol=1e-4)

    # Fallback path: general 2-D tap kernel (arbitrary / learned weights).
    out_gen = upsampling_forward(decoder_side_latent, weight,
                                 upsampling_kernel_size, force_general=True)
    out_gen = jax.block_until_ready(out_gen)
    np.testing.assert_allclose(np.asarray(out_gen), ref, rtol=1e-4, atol=1e-4)

    print("KERNEL_OK")
</pallas_src>

<mosaic_0001>
module attributes {stable_mosaic.version = 11 : i64} {
  func.func @_upsample_sep_kernel(%arg0: i32, %arg1: memref<16xf32, #tpu.memory_space<smem>>, %arg2: memref<4x4x2xf32, #tpu.memory_space<vmem>>, %arg3: memref<8x4x2x2xf32, #tpu.memory_space<vmem>>, %arg4: memref<12x12x2xf32, #tpu.memory_space<vmem>>) attributes {dimension_semantics = [#tpu.dimension_semantics<parallel>], iteration_bounds = array<i64: 1>, scalar_prefetch = 1 : i64, scratch_operands = 1 : i64, tpu.core_type = #tpu.core_type<tc>, window_params = [{transform_indices = @transform_0, window_bounds = array<i64: 4, 4, 2>}, {transform_indices = @transform_1, window_bounds = array<i64: 8, 4, 2, 2>}]} {
    %c0 = arith.constant 0 : index
    %c0_0 = arith.constant 0 : index
    %c0_1 = arith.constant 0 : index
    %0 = vector.load %arg2[%c0, %c0_0, %c0_1] : memref<4x4x2xf32, #tpu.memory_space<vmem>>, vector<4x4x2xf32>
    %c4 = arith.constant 4 : index
    %c4_2 = arith.constant 4 : index
    %c0_3 = arith.constant 0 : index
    %1 = vector.load %arg4[%c4, %c4_2, %c0_3] : memref<12x12x2xf32, #tpu.memory_space<vmem>>, vector<4x4x2xf32>
    tpu.vector_store %arg4[%c4, %c4_2, %c0_3], %0 {strides = array<i32>} : memref<12x12x2xf32, #tpu.memory_space<vmem>>, vector<4x4x2xf32>,
    %2 = vector.extract_strided_slice %0 {offsets = [0, 0, 0], sizes = [1, 4, 2], strides = [1, 1, 1]} : vector<4x4x2xf32> to vector<1x4x2xf32>
    %3 = vector.shape_cast %2 : vector<1x4x2xf32> to vector<1x4x2xf32>
    %4 = vector.broadcast %3 : vector<1x4x2xf32> to vector<4x4x2xf32>
    %c0_4 = arith.constant 0 : index
    %c4_5 = arith.constant 4 : index
    %c0_6 = arith.constant 0 : index
    %5 = vector.load %arg4[%c0_4, %c4_5, %c0_6] : memref<12x12x2xf32, #tpu.memory_space<vmem>>, vector<4x4x2xf32>
    tpu.vector_store %arg4[%c0_4, %c4_5, %c0_6], %4 {strides = array<i32>} : memref<12x12x2xf32, #tpu.memory_space<vmem>>, vector<4x4x2xf32>,
    %6 = vector.extract_strided_slice %0 {offsets = [3, 0, 0], sizes = [1, 4, 2], strides = [1, 1, 1]} : vector<4x4x2xf32> to vector<1x4x2xf32>
    %7 = vector.shape_cast %6 : vector<1x4x2xf32> to vector<1x4x2xf32>
    %8 = vector.broadcast %7 : vector<1x4x2xf32> to vector<4x4x2xf32>
    %c8 = arith.constant 8 : index
    %c4_7 = arith.constant 4 : index
    %c0_8 = arith.constant 0 : index
    %9 = vector.load %arg4[%c8, %c4_7, %c0_8] : memref<12x12x2xf32, #tpu.memory_space<vmem>>, vector<4x4x2xf32>
    tpu.vector_store %arg4[%c8, %c4_7, %c0_8], %8 {strides = array<i32>} : memref<12x12x2xf32, #tpu.memory_space<vmem>>, vector<4x4x2xf32>,
    %c0_9 = arith.constant 0 : index
    %c4_10 = arith.constant 4 : index
    %c0_11 = arith.constant 0 : index
    %10 = vector.load %arg4[%c0_9, %c4_10, %c0_11] : memref<12x12x2xf32, #tpu.memory_space<vmem>>, vector<12x1x2xf32>
    %11 = vector.shape_cast %10 : vector<12x1x2xf32> to vector<12x1x2xf32>
    %12 = vector.broadcast %11 : vector<12x1x2xf32> to vector<12x4x2xf32>
    %c0_12 = arith.constant 0 : index
    %c0_13 = arith.constant 0 : index
    %c0_14 = arith.constant 0 : index
    %13 = vector.load %arg4[%c0_12, %c0_13, %c0_14] : memref<12x12x2xf32, #tpu.memory_space<vmem>>, vector<12x4x2xf32>
    tpu.vector_store %arg4[%c0_12, %c0_13, %c0_14], %12 {strides = array<i32>} : memref<12x12x2xf32, #tpu.memory_space<vmem>>, vector<12x4x2xf32>,
    %c0_15 = arith.constant 0 : index
    %c7 = arith.constant 7 : index
    %c0_16 = arith.constant 0 : index
    %14 = vector.load %arg4[%c0_15, %c7, %c0_16] : memref<12x12x2xf32, #tpu.memory_space<vmem>>, vector<12x1x2xf32>
    %15 = vector.shape_cast %14 : vector<12x1x2xf32> to vector<12x1x2xf32>
    %16 = vector.broadcast %15 : vector<12x1x2xf32> to vector<12x4x2xf32>
    %c0_17 = arith.constant 0 : index
    %c8_18 = arith.constant 8 : index
    %c0_19 = arith.constant 0 : index
    %17 = vector.load %arg4[%c0_17, %c8_18, %c0_19] : memref<12x12x2xf32, #tpu.memory_space<vmem>>, vector<12x4x2xf32>
    tpu.vector_store %arg4[%c0_17, %c8_18, %c0_19], %16 {strides = array<i32>} : memref<12x12x2xf32, #tpu.memory_space<vmem>>, vector<12x4x2xf32>,
    %c0_20 = arith.constant 0 : index
    %c2 = arith.constant 2 : index
    %c0_21 = arith.constant 0 : index
    %18 = vector.load %arg4[%c0_20, %c2, %c0_21] : memref<12x12x2xf32, #tpu.memory_space<vmem>>, vector<12x5x2xf32>
    %c15 = arith.constant 15 : index
    %19 = memref.load %arg1[%c15] : memref<16xf32, #tpu.memory_space<smem>>
    %20 = vector.broadcast %19 : f32 to vector<12x5x2xf32>
    %21 = arith.mulf %20, %18 : vector<12x5x2xf32>
    %c0_22 = arith.constant 0 : index
    %c3 = arith.constant 3 : index
    %c0_23 = arith.constant 0 : index
    %22 = vector.load %arg4[%c0_22, %c3, %c0_23] : memref<12x12x2xf32, #tpu.memory_space<vmem>>, vector<12x5x2xf32>
    %c13 = arith.constant 13 : index
    %23 = memref.load %arg1[%c13] : memref<16xf32, #tpu.memory_space<smem>>
    %24 = vector.broadcast %23 : f32 to vector<12x5x2xf32>
    %25 = arith.mulf %24, %22 : vector<12x5x2xf32>
    %26 = arith.addf %21, %25 : vector<12x5x2xf32>
    %c14 = arith.constant 14 : index
    %27 = memref.load %arg1[%c14] : memref<16xf32, #tpu.memory_space<smem>>
    %28 = vector.broadcast %27 : f32 to vector<12x5x2xf32>
    %29 = arith.mulf %28, %22 : vector<12x5x2xf32>
    %c0_24 = arith.constant 0 : index
    %c4_25 = arith.constant 4 : index
    %c0_26 = arith.constant 0 : index
    %30 = vector.load %arg4[%c0_24, %c4_25, %c0_26] : memref<12x12x2xf32, #tpu.memory_space<vmem>>, vector<12x5x2xf32>
    %c11 = arith.constant 11 : index
    %31 = memref.load %arg1[%c11] : memref<16xf32, #tpu.memory_space<smem>>
    %32 = vector.broadcast %31 : f32 to vector<12x5x2xf32>
    %33 = arith.mulf %32, %30 : vector<12x5x2xf32>
    %34 = arith.addf %26, %33 : vector<12x5x2xf32>
    %c12 = arith.constant 12 : index
    %35 = memref.load %arg1[%c12] : memref<16xf32, #tpu.memory_space<smem>>
    %36 = vector.broadcast %35 : f32 to vector<12x5x2xf32>
    %37 = arith.mulf %36, %30 : vector<12x5x2xf32>
    %38 = arith.addf %29, %37 : vector<12x5x2xf32>
    %c0_27 = arith.constant 0 : index
    %c5 = arith.constant 5 : index
    %c0_28 = arith.constant 0 : index
    %39 = vector.load %arg4[%c0_27, %c5, %c0_28] : memref<12x12x2xf32, #tpu.memory_space<vmem>>, vector<12x5x2xf32>
    %c9 = arith.constant 9 : index
    %40 = memref.load %arg1[%c9] : memref<16xf32, #tpu.memory_space<smem>>
    %41 = vector.broadcast %40 : f32 to vector<12x5x2xf32>
    %42 = arith.mulf %41, %39 : vector<12x5x2xf32>
    %43 = arith.addf %34, %42 : vector<12x5x2xf32>
    %c10 = arith.constant 10 : index
    %44 = memref.load %arg1[%c10] : memref<16xf32, #tpu.memory_space<smem>>
    %45 = vector.broadcast %44 : f32 to vector<12x5x2xf32>
    %46 = arith.mulf %45, %39 : vector<12x5x2xf32>
    %47 = arith.addf %38, %46 : vector<12x5x2xf32>
    %c0_29 = arith.constant 0 : index
    %c6 = arith.constant 6 : index
    %c0_30 = arith.constant 0 : index
    %48 = vector.load %arg4[%c0_29, %c6, %c0_30] : memref<12x12x2xf32, #tpu.memory_space<vmem>>, vector<12x5x2xf32>
    %c8_31 = arith.constant 8 : index
    %49 = memref.load %arg1[%c8_31] : memref<16xf32, #tpu.memory_space<smem>>
    %50 = vector.broadcast %49 : f32 to vector<12x5x2xf32>
    %51 = arith.mulf %50, %48 : vector<12x5x2xf32>
    %52 = arith.addf %47, %51 : vector<12x5x2xf32>
    %c1 = arith.constant 1 : index
    %53 = memref.load %arg1[%c1] : memref<16xf32, #tpu.memory_space<smem>>
    %54 = vector.extract_strided_slice %43 {offsets = [5, 0, 0], sizes = [5, 5, 2], strides = [1, 1, 1]} : vector<12x5x2xf32> to vector<5x5x2xf32>
    %55 = vector.broadcast %53 : f32 to vector<5x5x2xf32>
    %56 = arith.mulf %55, %54 : vector<5x5x2xf32>
    %57 = vector.extract_strided_slice %52 {offsets = [5, 0, 0], sizes = [5, 5, 2], strides = [1, 1, 1]} : vector<12x5x2xf32> to vector<5x5x2xf32>
    %58 = vector.broadcast %53 : f32 to vector<5x5x2xf32>
    %59 = arith.mulf %58, %57 : vector<5x5x2xf32>
    %c3_32 = arith.constant 3 : index
    %60 = memref.load %arg1[%c3_32] : memref<16xf32, #tpu.memory_space<smem>>
    %61 = vector.extract_strided_slice %43 {offsets = [4, 0, 0], sizes = [5, 5, 2], strides = [1, 1, 1]} : vector<12x5x2xf32> to vector<5x5x2xf32>
    %62 = vector.broadcast %60 : f32 to vector<5x5x2xf32>
    %63 = arith.mulf %62, %61 : vector<5x5x2xf32>
    %64 = arith.addf %56, %63 : vector<5x5x2xf32>
    %65 = vector.extract_strided_slice %52 {offsets = [4, 0, 0], sizes = [5, 5, 2], strides = [1, 1, 1]} : vector<12x5x2xf32> to vector<5x5x2xf32>
    %66 = vector.broadcast %60 : f32 to vector<5x5x2xf32>
    %67 = arith.mulf %66, %65 : vector<5x5x2xf32>
    %68 = arith.addf %59, %67 : vector<5x5x2xf32>
    %c5_33 = arith.constant 5 : index
    %69 = memref.load %arg1[%c5_33] : memref<16xf32, #tpu.memory_space<smem>>
    %70 = vector.extract_strided_slice %43 {offsets = [3, 0, 0], sizes = [5, 5, 2], strides = [1, 1, 1]} : vector<12x5x2xf32> to vector<5x5x2xf32>
    %71 = vector.broadcast %69 : f32 to vector<5x5x2xf32>
    %72 = arith.mulf %71, %70 : vector<5x5x2xf32>
    %73 = arith.addf %64, %72 : vector<5x5x2xf32>
    %74 = vector.extract_strided_slice %52 {offsets = [3, 0, 0], sizes = [5, 5, 2], strides = [1, 1, 1]} : vector<12x5x2xf32> to vector<5x5x2xf32>
    %75 = vector.broadcast %69 : f32 to vector<5x5x2xf32>
    %76 = arith.mulf %75, %74 : vector<5x5x2xf32>
    %77 = arith.addf %68, %76 : vector<5x5x2xf32>
    %c7_34 = arith.constant 7 : index
    %78 = memref.load %arg1[%c7_34] : memref<16xf32, #tpu.memory_space<smem>>
    %79 = vector.extract_strided_slice %43 {offsets = [2, 0, 0], sizes = [5, 5, 2], strides = [1, 1, 1]} : vector<12x5x2xf32> to vector<5x5x2xf32>
    %80 = vector.broadcast %78 : f32 to vector<5x5x2xf32>
    %81 = arith.mulf %80, %79 : vector<5x5x2xf32>
    %82 = arith.addf %73, %81 : vector<5x5x2xf32>
    %83 = vector.extract_strided_slice %52 {offsets = [2, 0, 0], sizes = [5, 5, 2], strides = [1, 1, 1]} : vector<12x5x2xf32> to vector<5x5x2xf32>
    %84 = vector.broadcast %78 : f32 to vector<5x5x2xf32>
    %85 = arith.mulf %84, %83 : vector<5x5x2xf32>
    %86 = arith.addf %77, %85 : vector<5x5x2xf32>
    %c0_35 = arith.constant 0 : index
    %87 = memref.load %arg1[%c0_35] : memref<16xf32, #tpu.memory_space<smem>>
    %88 = vector.extract_strided_slice %43 {offsets = [6, 0, 0], sizes = [5, 5, 2], strides = [1, 1, 1]} : vector<12x5x2xf32> to vector<5x5x2xf32>
    %89 = vector.broadcast %87 : f32 to vector<5x5x2xf32>
    %90 = arith.mulf %89, %88 : vector<5x5x2xf32>
    %91 = vector.extract_strided_slice %52 {offsets = [6, 0, 0], sizes = [5, 5, 2], strides = [1, 1, 1]} : vector<12x5x2xf32> to vector<5x5x2xf32>
    %92 = vector.broadcast %87 : f32 to vector<5x5x2xf32>
    %93 = arith.mulf %92, %91 : vector<5x5x2xf32>
    %c2_36 = arith.constant 2 : index
    %94 = memref.load %arg1[%c2_36] : memref<16xf32, #tpu.memory_space<smem>>
    %95 = vector.extract_strided_slice %43 {offsets = [5, 0, 0], sizes = [5, 5, 2], strides = [1, 1, 1]} : vector<12x5x2xf32> to vector<5x5x2xf32>
    %96 = vector.broadcast %94 : f32 to vector<5x5x2xf32>
    %97 = arith.mulf %96, %95 : vector<5x5x2xf32>
    %98 = arith.addf %90, %97 : vector<5x5x2xf32>
    %99 = vector.extract_strided_slice %52 {offsets = [5, 0, 0], sizes = [5, 5, 2], strides = [1, 1, 1]} : vector<12x5x2xf32> to vector<5x5x2xf32>
    %100 = vector.broadcast %94 : f32 to vector<5x5x2xf32>
    %101 = arith.mulf %100, %99 : vector<5x5x2xf32>
    %102 = arith.addf %93, %101 : vector<5x5x2xf32>
    %c4_37 = arith.constant 4 : index
    %103 = memref.load %arg1[%c4_37] : memref<16xf32, #tpu.memory_space<smem>>
    %104 = vector.extract_strided_slice %43 {offsets = [4, 0, 0], sizes = [5, 5, 2], strides = [1, 1, 1]} : vector<12x5x2xf32> to vector<5x5x2xf32>
    %105 = vector.broadcast %103 : f32 to vector<5x5x2xf32>
    %106 = arith.mulf %105, %104 : vector<5x5x2xf32>
    %107 = arith.addf %98, %106 : vector<5x5x2xf32>
    %108 = vector.extract_strided_slice %52 {offsets = [4, 0, 0], sizes = [5, 5, 2], strides = [1, 1, 1]} : vector<12x5x2xf32> to vector<5x5x2xf32>
    %109 = vector.broadcast %103 : f32 to vector<5x5x2xf32>
    %110 = arith.mulf %109, %108 : vector<5x5x2xf32>
    %111 = arith.addf %102, %110 : vector<5x5x2xf32>
    %c6_38 = arith.constant 6 : index
    %112 = memref.load %arg1[%c6_38] : memref<16xf32, #tpu.memory_space<smem>>
    %113 = vector.extract_strided_slice %43 {offsets = [3, 0, 0], sizes = [5, 5, 2], strides = [1, 1, 1]} : vector<12x5x2xf32> to vector<5x5x2xf32>
    %114 = vector.broadcast %112 : f32 to vector<5x5x2xf32>
    %115 = arith.mulf %114, %113 : vector<5x5x2xf32>
    %116 = arith.addf %107, %115 : vector<5x5x2xf32>
    %117 = vector.extract_strided_slice %52 {offsets = [3, 0, 0], sizes = [5, 5, 2], strides = [1, 1, 1]} : vector<12x5x2xf32> to vector<5x5x2xf32>
    %118 = vector.broadcast %112 : f32 to vector<5x5x2xf32>
    %119 = arith.mulf %118, %117 : vector<5x5x2xf32>
    %120 = arith.addf %111, %119 : vector<5x5x2xf32>
    %121 = vector.shape_cast %82 : vector<5x5x2xf32> to vector<5x1x5x2xf32>
    %122 = vector.shape_cast %116 : vector<5x5x2xf32> to vector<5x1x5x2xf32>
    %123 = tpu.concatenate %121, %122 in 1 : vector<5x1x5x2xf32>, vector<5x1x5x2xf32> -> vector<5x2x5x2xf32>
    %124 = vector.shape_cast %123 : vector<5x2x5x2xf32> to vector<10x5x2xf32>
    %125 = vector.extract_strided_slice %124 {offsets = [0, 0, 0], sizes = [8, 4, 2], strides = [1, 1, 1]} : vector<10x5x2xf32> to vector<8x4x2xf32>
    %c0_39 = arith.constant 0 : index
    %c0_40 = arith.constant 0 : index
    %c0_41 = arith.constant 0 : index
    %c0_42 = arith.constant 0 : index
    %126 = vector.load %arg3[%c0_39, %c0_40, %c0_41, %c0_42] : memref<8x4x2x2xf32, #tpu.memory_space<vmem>>, vector<8x4x1x2xf32>
    %127 = vector.shape_cast %126 : vector<8x4x1x2xf32> to vector<8x4x2xf32>
    %128 = vector.shape_cast %125 : vector<8x4x2xf32> to vector<8x4x1x2xf32>
    tpu.vector_store %arg3[%c0_39, %c0_40, %c0_41, %c0_42], %128 {strides = array<i32>} : memref<8x4x2x2xf32, #tpu.memory_space<vmem>>, vector<8x4x1x2xf32>,
    %129 = vector.shape_cast %86 : vector<5x5x2xf32> to vector<5x1x5x2xf32>
    %130 = vector.shape_cast %120 : vector<5x5x2xf32> to vector<5x1x5x2xf32>
    %131 = tpu.concatenate %129, %130 in 1 : vector<5x1x5x2xf32>, vector<5x1x5x2xf32> -> vector<5x2x5x2xf32>
    %132 = vector.shape_cast %131 : vector<5x2x5x2xf32> to vector<10x5x2xf32>
    %133 = vector.extract_strided_slice %132 {offsets = [0, 0, 0], sizes = [8, 4, 2], strides = [1, 1, 1]} : vector<10x5x2xf32> to vector<8x4x2xf32>
    %c0_43 = arith.constant 0 : index
    %c0_44 = arith.constant 0 : index
    %c1_45 = arith.constant 1 : index
    %c0_46 = arith.constant 0 : index
    %134 = vector.load %arg3[%c0_43, %c0_44, %c1_45, %c0_46] : memref<8x4x2x2xf32, #tpu.memory_space<vmem>>, vector<8x4x1x2xf32>
    %135 = vector.shape_cast %134 : vector<8x4x1x2xf32> to vector<8x4x2xf32>
    %136 = vector.shape_cast %133 : vector<8x4x2xf32> to vector<8x4x1x2xf32>
    tpu.vector_store %arg3[%c0_43, %c0_44, %c1_45, %c0_46], %136 {strides = array<i32>} : memref<8x4x2x2xf32, #tpu.memory_space<vmem>>, vector<8x4x1x2xf32>,
    return
  }
  func.func @transform_0(%arg0: i32, %arg1: memref<16xf32, #tpu.memory_space<smem>>) -> (i32, i32, i32) {
    %c0_i32 = arith.constant 0 : i32
    %c0_i32_0 = arith.constant 0 : i32
    %c0_i32_1 = arith.constant 0 : i32
    return %c0_i32, %c0_i32_0, %arg0 : i32, i32, i32
  }
  func.func @transform_1(%arg0: i32, %arg1: memref<16xf32, #tpu.memory_space<smem>>) -> (i32, i32, i32, i32) {
    %c0_i32 = arith.constant 0 : i32
    %c0_i32_0 = arith.constant 0 : i32
    %c0_i32_1 = arith.constant 0 : i32
    %c0_i32_2 = arith.constant 0 : i32
    return %c0_i32, %c0_i32_0, %c0_i32_1, %arg0 : i32, i32, i32, i32
  }
}

module attributes {stable_mosaic.version = 11 : i64} {
  func.func @_upsample_sep_kernel_compat(%arg0: i32, %arg1: memref<16xf32, #tpu.memory_space<smem>>, %arg2: memref<4x4x2xf32, #tpu.memory_space<vmem>>, %arg3: memref<2x2x5x5x2xf32, #tpu.memory_space<vmem>>) attributes {dimension_semantics = [#tpu.dimension_semantics<parallel>], iteration_bounds = array<i64: 1>, scalar_prefetch = 1 : i64, scratch_operands = 0 : i64, tpu.core_type = #tpu.core_type<tc>, window_params = [{transform_indices = @transform_0, window_bounds = array<i64: 4, 4, 2>}, {transform_indices = @transform_1, window_bounds = array<i64: 2, 2, 5, 5, 2>}]} {
    %c0 = arith.constant 0 : index
    %c0_0 = arith.constant 0 : index
    %c0_1 = arith.constant 0 : index
    %0 = vector.load %arg2[%c0, %c0_0, %c0_1] : memref<4x4x2xf32, #tpu.memory_space<vmem>>, vector<4x4x2xf32>
    %1 = vector.extract_strided_slice %0 {offsets = [0, 0, 0], sizes = [1, 4, 2], strides = [1, 1, 1]} : vector<4x4x2xf32> to vector<1x4x2xf32>
    %2 = vector.shape_cast %1 : vector<1x4x2xf32> to vector<1x4x2xf32>
    %3 = vector.broadcast %2 : vector<1x4x2xf32> to vector<4x4x2xf32>
    %4 = vector.extract_strided_slice %0 {offsets = [3, 0, 0], sizes = [1, 4, 2], strides = [1, 1, 1]} : vector<4x4x2xf32> to vector<1x4x2xf32>
    %5 = vector.shape_cast %4 : vector<1x4x2xf32> to vector<1x4x2xf32>
    %6 = vector.broadcast %5 : vector<1x4x2xf32> to vector<4x4x2xf32>
    %7 = tpu.concatenate %3, %0, %6 in 0 : vector<4x4x2xf32>, vector<4x4x2xf32>, vector<4x4x2xf32> -> vector<12x4x2xf32>
    %8 = vector.extract_strided_slice %7 {offsets = [0, 0, 0], sizes = [12, 1, 2], strides = [1, 1, 1]} : vector<12x4x2xf32> to vector<12x1x2xf32>
    %9 = vector.shape_cast %8 : vector<12x1x2xf32> to vector<12x1x2xf32>
    %10 = vector.broadcast %9 : vector<12x1x2xf32> to vector<12x4x2xf32>
    %11 = vector.extract_strided_slice %7 {offsets = [0, 3, 0], sizes = [12, 1, 2], strides = [1, 1, 1]} : vector<12x4x2xf32> to vector<12x1x2xf32>
    %12 = vector.shape_cast %11 : vector<12x1x2xf32> to vector<12x1x2xf32>
    %13 = vector.broadcast %12 : vector<12x1x2xf32> to vector<12x4x2xf32>
    %14 = tpu.concatenate %10, %7, %13 in 1 : vector<12x4x2xf32>, vector<12x4x2xf32>, vector<12x4x2xf32> -> vector<12x12x2xf32>
    %c1 = arith.constant 1 : index
    %15 = memref.load %arg1[%c1] : memref<16xf32, #tpu.memory_space<smem>>
    %16 = vector.extract_strided_slice %14 {offsets = [5, 0, 0], sizes = [5, 12, 2], strides = [1, 1, 1]} : vector<12x12x2xf32> to vector<5x12x2xf32>
    %17 = vector.broadcast %15 : f32 to vector<5x12x2xf32>
    %18 = arith.mulf %17, %16 : vector<5x12x2xf32>
    %c3 = arith.constant 3 : index
    %19 = memref.load %arg1[%c3] : memref<16xf32, #tpu.memory_space<smem>>
    %20 = vector.extract_strided_slice %14 {offsets = [4, 0, 0], sizes = [5, 12, 2], strides = [1, 1, 1]} : vector<12x12x2xf32> to vector<5x12x2xf32>
    %21 = vector.broadcast %19 : f32 to vector<5x12x2xf32>
    %22 = arith.mulf %21, %20 : vector<5x12x2xf32>
    %23 = arith.addf %18, %22 : vector<5x12x2xf32>
    %c5 = arith.constant 5 : index
    %24 = memref.load %arg1[%c5] : memref<16xf32, #tpu.memory_space<smem>>
    %25 = vector.extract_strided_slice %14 {offsets = [3, 0, 0], sizes = [5, 12, 2], strides = [1, 1, 1]} : vector<12x12x2xf32> to vector<5x12x2xf32>
    %26 = vector.broadcast %24 : f32 to vector<5x12x2xf32>
    %27 = arith.mulf %26, %25 : vector<5x12x2xf32>
    %28 = arith.addf %23, %27 : vector<5x12x2xf32>
    %c7 = arith.constant 7 : index
    %29 = memref.load %arg1[%c7] : memref<16xf32, #tpu.memory_space<smem>>
    %30 = vector.extract_strided_slice %14 {offsets = [2, 0, 0], sizes = [5, 12, 2], strides = [1, 1, 1]} : vector<12x12x2xf32> to vector<5x12x2xf32>
    %31 = vector.broadcast %29 : f32 to vector<5x12x2xf32>
    %32 = arith.mulf %31, %30 : vector<5x12x2xf32>
    %33 = arith.addf %28, %32 : vector<5x12x2xf32>
    %c0_2 = arith.constant 0 : index
    %34 = memref.load %arg1[%c0_2] : memref<16xf32, #tpu.memory_space<smem>>
    %35 = vector.extract_strided_slice %14 {offsets = [6, 0, 0], sizes = [5, 12, 2], strides = [1, 1, 1]} : vector<12x12x2xf32> to vector<5x12x2xf32>
    %36 = vector.broadcast %34 : f32 to vector<5x12x2xf32>
    %37 = arith.mulf %36, %35 : vector<5x12x2xf32>
    %c2 = arith.constant 2 : index
    %38 = memref.load %arg1[%c2] : memref<16xf32, #tpu.memory_space<smem>>
    %39 = vector.extract_strided_slice %14 {offsets = [5, 0, 0], sizes = [5, 12, 2], strides = [1, 1, 1]} : vector<12x12x2xf32> to vector<5x12x2xf32>
    %40 = vector.broadcast %38 : f32 to vector<5x12x2xf32>
    %41 = arith.mulf %40, %39 : vector<5x12x2xf32>
    %42 = arith.addf %37, %41 : vector<5x12x2xf32>
    %c4 = arith.constant 4 : index
    %43 = memref.load %arg1[%c4] : memref<16xf32, #tpu.memory_space<smem>>
    %44 = vector.extract_strided_slice %14 {offsets = [4, 0, 0], sizes = [5, 12, 2], strides = [1, 1, 1]} : vector<12x12x2xf32> to vector<5x12x2xf32>
    %45 = vector.broadcast %43 : f32 to vector<5x12x2xf32>
    %46 = arith.mulf %45, %44 : vector<5x12x2xf32>
    %47 = arith.addf %42, %46 : vector<5x12x2xf32>
    %c6 = arith.constant 6 : index
    %48 = memref.load %arg1[%c6] : memref<16xf32, #tpu.memory_space<smem>>
    %49 = vector.extract_strided_slice %14 {offsets = [3, 0, 0], sizes = [5, 12, 2], strides = [1, 1, 1]} : vector<12x12x2xf32> to vector<5x12x2xf32>
    %50 = vector.broadcast %48 : f32 to vector<5x12x2xf32>
    %51 = arith.mulf %50, %49 : vector<5x12x2xf32>
    %52 = arith.addf %47, %51 : vector<5x12x2xf32>
    %c9 = arith.constant 9 : index
    %53 = memref.load %arg1[%c9] : memref<16xf32, #tpu.memory_space<smem>>
    %54 = vector.extract_strided_slice %33 {offsets = [0, 5, 0], sizes = [5, 5, 2], strides = [1, 1, 1]} : vector<5x12x2xf32> to vector<5x5x2xf32>
    %55 = vector.broadcast %53 : f32 to vector<5x5x2xf32>
    %56 = arith.mulf %55, %54 : vector<5x5x2xf32>
    %c11 = arith.constant 11 : index
    %57 = memref.load %arg1[%c11] : memref<16xf32, #tpu.memory_space<smem>>
    %58 = vector.extract_strided_slice %33 {offsets = [0, 4, 0], sizes = [5, 5, 2], strides = [1, 1, 1]} : vector<5x12x2xf32> to vector<5x5x2xf32>
    %59 = vector.broadcast %57 : f32 to vector<5x5x2xf32>
    %60 = arith.mulf %59, %58 : vector<5x5x2xf32>
    %61 = arith.addf %56, %60 : vector<5x5x2xf32>
    %c13 = arith.constant 13 : index
    %62 = memref.load %arg1[%c13] : memref<16xf32, #tpu.memory_space<smem>>
    %63 = vector.extract_strided_slice %33 {offsets = [0, 3, 0], sizes = [5, 5, 2], strides = [1, 1, 1]} : vector<5x12x2xf32> to vector<5x5x2xf32>
    %64 = vector.broadcast %62 : f32 to vector<5x5x2xf32>
    %65 = arith.mulf %64, %63 : vector<5x5x2xf32>
    %66 = arith.addf %61, %65 : vector<5x5x2xf32>
    %c15 = arith.constant 15 : index
    %67 = memref.load %arg1[%c15] : memref<16xf32, #tpu.memory_space<smem>>
    %68 = vector.extract_strided_slice %33 {offsets = [0, 2, 0], sizes = [5, 5, 2], strides = [1, 1, 1]} : vector<5x12x2xf32> to vector<5x5x2xf32>
    %69 = vector.broadcast %67 : f32 to vector<5x5x2xf32>
    %70 = arith.mulf %69, %68 : vector<5x5x2xf32>
    %71 = arith.addf %66, %70 : vector<5x5x2xf32>
    %c0_3 = arith.constant 0 : index
    %c0_4 = arith.constant 0 : index
    %c0_5 = arith.constant 0 : index
    %c0_6 = arith.constant 0 : index
    %c0_7 = arith.constant 0 : index
    %72 = vector.load %arg3[%c0_3, %c0_4, %c0_5, %c0_6, %c0_7] : memref<2x2x5x5x2xf32, #tpu.memory_space<vmem>>, vector<1x1x5x5x2xf32>
    %73 = vector.shape_cast %72 : vector<1x1x5x5x2xf32> to vector<5x5x2xf32>
    %74 = vector.shape_cast %71 : vector<5x5x2xf32> to vector<1x1x5x5x2xf32>
    tpu.vector_store %arg3[%c0_3, %c0_4, %c0_5, %c0_6, %c0_7], %74 {strides = array<i32>} : memref<2x2x5x5x2xf32, #tpu.memory_space<vmem>>, vector<1x1x5x5x2xf32>,
    %c8 = arith.constant 8 : index
    %75 = memref.load %arg1[%c8] : memref<16xf32, #tpu.memory_space<smem>>
    %76 = vector.extract_strided_slice %33 {offsets = [0, 6, 0], sizes = [5, 5, 2], strides = [1, 1, 1]} : vector<5x12x2xf32> to vector<5x5x2xf32>
    %77 = vector.broadcast %75 : f32 to vector<5x5x2xf32>
    %78 = arith.mulf %77, %76 : vector<5x5x2xf32>
    %c10 = arith.constant 10 : index
    %79 = memref.load %arg1[%c10] : memref<16xf32, #tpu.memory_space<smem>>
    %80 = vector.extract_strided_slice %33 {offsets = [0, 5, 0], sizes = [5, 5, 2], strides = [1, 1, 1]} : vector<5x12x2xf32> to vector<5x5x2xf32>
    %81 = vector.broadcast %79 : f32 to vector<5x5x2xf32>
    %82 = arith.mulf %81, %80 : vector<5x5x2xf32>
    %83 = arith.addf %78, %82 : vector<5x5x2xf32>
    %c12 = arith.constant 12 : index
    %84 = memref.load %arg1[%c12] : memref<16xf32, #tpu.memory_space<smem>>
    %85 = vector.extract_strided_slice %33 {offsets = [0, 4, 0], sizes = [5, 5, 2], strides = [1, 1, 1]} : vector<5x12x2xf32> to vector<5x5x2xf32>
    %86 = vector.broadcast %84 : f32 to vector<5x5x2xf32>
    %87 = arith.mulf %86, %85 : vector<5x5x2xf32>
    %88 = arith.addf %83, %87 : vector<5x5x2xf32>
    %c14 = arith.constant 14 : index
    %89 = memref.load %arg1[%c14] : memref<16xf32, #tpu.memory_space<smem>>
    %90 = vector.extract_strided_slice %33 {offsets = [0, 3, 0], sizes = [5, 5, 2], strides = [1, 1, 1]} : vector<5x12x2xf32> to vector<5x5x2xf32>
    %91 = vector.broadcast %89 : f32 to vector<5x5x2xf32>
    %92 = arith.mulf %91, %90 : vector<5x5x2xf32>
    %93 = arith.addf %88, %92 : vector<5x5x2xf32>
    %c0_8 = arith.constant 0 : index
    %c1_9 = arith.constant 1 : index
    %c0_10 = arith.constant 0 : index
    %c0_11 = arith.constant 0 : index
    %c0_12 = arith.constant 0 : index
    %94 = vector.load %arg3[%c0_8, %c1_9, %c0_10, %c0_11, %c0_12] : memref<2x2x5x5x2xf32, #tpu.memory_space<vmem>>, vector<1x1x5x5x2xf32>
    %95 = vector.shape_cast %94 : vector<1x1x5x5x2xf32> to vector<5x5x2xf32>
    %96 = vector.shape_cast %93 : vector<5x5x2xf32> to vector<1x1x5x5x2xf32>
    tpu.vector_store %arg3[%c0_8, %c1_9, %c0_10, %c0_11, %c0_12], %96 {strides = array<i32>} : memref<2x2x5x5x2xf32, #tpu.memory_space<vmem>>, vector<1x1x5x5x2xf32>,
    %c9_13 = arith.constant 9 : index
    %97 = memref.load %arg1[%c9_13] : memref<16xf32, #tpu.memory_space<smem>>
    %98 = vector.extract_strided_slice %52 {offsets = [0, 5, 0], sizes = [5, 5, 2], strides = [1, 1, 1]} : vector<5x12x2xf32> to vector<5x5x2xf32>
    %99 = vector.broadcast %97 : f32 to vector<5x5x2xf32>
    %100 = arith.mulf %99, %98 : vector<5x5x2xf32>
    %c11_14 = arith.constant 11 : index
    %101 = memref.load %arg1[%c11_14] : memref<16xf32, #tpu.memory_space<smem>>
    %102 = vector.extract_strided_slice %52 {offsets = [0, 4, 0], sizes = [5, 5, 2], strides = [1, 1, 1]} : vector<5x12x2xf32> to vector<5x5x2xf32>
    %103 = vector.broadcast %101 : f32 to vector<5x5x2xf32>
    %104 = arith.mulf %103, %102 : vector<5x5x2xf32>
    %105 = arith.addf %100, %104 : vector<5x5x2xf32>
    %c13_15 = arith.constant 13 : index
    %106 = memref.load %arg1[%c13_15] : memref<16xf32, #tpu.memory_space<smem>>
    %107 = vector.extract_strided_slice %52 {offsets = [0, 3, 0], sizes = [5, 5, 2], strides = [1, 1, 1]} : vector<5x12x2xf32> to vector<5x5x2xf32>
    %108 = vector.broadcast %106 : f32 to vector<5x5x2xf32>
    %109 = arith.mulf %108, %107 : vector<5x5x2xf32>
    %110 = arith.addf %105, %109 : vector<5x5x2xf32>
    %c15_16 = arith.constant 15 : index
    %111 = memref.load %arg1[%c15_16] : memref<16xf32, #tpu.memory_space<smem>>
    %112 = vector.extract_strided_slice %52 {offsets = [0, 2, 0], sizes = [5, 5, 2], strides = [1, 1, 1]} : vector<5x12x2xf32> to vector<5x5x2xf32>
    %113 = vector.broadcast %111 : f32 to vector<5x5x2xf32>
    %114 = arith.mulf %113, %112 : vector<5x5x2xf32>
    %115 = arith.addf %110, %114 : vector<5x5x2xf32>
    %c1_17 = arith.constant 1 : index
    %c0_18 = arith.constant 0 : index
    %c0_19 = arith.constant 0 : index
    %c0_20 = arith.constant 0 : index
    %c0_21 = arith.constant 0 : index
    %116 = vector.load %arg3[%c1_17, %c0_18, %c0_19, %c0_20, %c0_21] : memref<2x2x5x5x2xf32, #tpu.memory_space<vmem>>, vector<1x1x5x5x2xf32>
    %117 = vector.shape_cast %116 : vector<1x1x5x5x2xf32> to vector<5x5x2xf32>
    %118 = vector.shape_cast %115 : vector<5x5x2xf32> to vector<1x1x5x5x2xf32>
    tpu.vector_store %arg3[%c1_17, %c0_18, %c0_19, %c0_20, %c0_21], %118 {strides = array<i32>} : memref<2x2x5x5x2xf32, #tpu.memory_space<vmem>>, vector<1x1x5x5x2xf32>,
    %c8_22 = arith.constant 8 : index
    %119 = memref.load %arg1[%c8_22] : memref<16xf32, #tpu.memory_space<smem>>
    %120 = vector.extract_strided_slice %52 {offsets = [0, 6, 0], sizes = [5, 5, 2], strides = [1, 1, 1]} : vector<5x12x2xf32> to vector<5x5x2xf32>
    %121 = vector.broadcast %119 : f32 to vector<5x5x2xf32>
    %122 = arith.mulf %121, %120 : vector<5x5x2xf32>
    %c10_23 = arith.constant 10 : index
    %123 = memref.load %arg1[%c10_23] : memref<16xf32, #tpu.memory_space<smem>>
    %124 = vector.extract_strided_slice %52 {offsets = [0, 5, 0], sizes = [5, 5, 2], strides = [1, 1, 1]} : vector<5x12x2xf32> to vector<5x5x2xf32>
    %125 = vector.broadcast %123 : f32 to vector<5x5x2xf32>
    %126 = arith.mulf %125, %124 : vector<5x5x2xf32>
    %127 = arith.addf %122, %126 : vector<5x5x2xf32>
    %c12_24 = arith.constant 12 : index
    %128 = memref.load %arg1[%c12_24] : memref<16xf32, #tpu.memory_space<smem>>
    %129 = vector.extract_strided_slice %52 {offsets = [0, 4, 0], sizes = [5, 5, 2], strides = [1, 1, 1]} : vector<5x12x2xf32> to vector<5x5x2xf32>
    %130 = vector.broadcast %128 : f32 to vector<5x5x2xf32>
    %131 = arith.mulf %130, %129 : vector<5x5x2xf32>
    %132 = arith.addf %127, %131 : vector<5x5x2xf32>
    %c14_25 = arith.constant 14 : index
    %133 = memref.load %arg1[%c14_25] : memref<16xf32, #tpu.memory_space<smem>>
    %134 = vector.extract_strided_slice %52 {offsets = [0, 3, 0], sizes = [5, 5, 2], strides = [1, 1, 1]} : vector<5x12x2xf32> to vector<5x5x2xf32>
    %135 = vector.broadcast %133 : f32 to vector<5x5x2xf32>
    %136 = arith.mulf %135, %134 : vector<5x5x2xf32>
    %137 = arith.addf %132, %136 : vector<5x5x2xf32>
    %c1_26 = arith.constant 1 : index
    %c1_27 = arith.constant 1 : index
    %c0_28 = arith.constant 0 : index
    %c0_29 = arith.constant 0 : index
    %c0_30 = arith.constant 0 : index
    %138 = vector.load %arg3[%c1_26, %c1_27, %c0_28, %c0_29, %c0_30] : memref<2x2x5x5x2xf32, #tpu.memory_space<vmem>>, vector<1x1x5x5x2xf32>
    %139 = vector.shape_cast %138 : vector<1x1x5x5x2xf32> to vector<5x5x2xf32>
    %140 = vector.shape_cast %137 : vector<5x5x2xf32> to vector<1x1x5x5x2xf32>
    tpu.vector_store %arg3[%c1_26, %c1_27, %c0_28, %c0_29, %c0_30], %140 {strides = array<i32>} : memref<2x2x5x5x2xf32, #tpu.memory_space<vmem>>, vector<1x1x5x5x2xf32>,
    return
  }
  func.func @transform_0(%arg0: i32, %arg1: memref<16xf32, #tpu.memory_space<smem>>) -> (i32, i32, i32) {
    %c0_i32 = arith.constant 0 : i32
    %c0_i32_0 = arith.constant 0 : i32
    %c0_i32_1 = arith.constant 0 : i32
    return %c0_i32, %c0_i32_0, %arg0 : i32, i32, i32
  }
  func.func @transform_1(%arg0: i32, %arg1: memref<16xf32, #tpu.memory_space<smem>>) -> (i32, i32, i32, i32, i32) {
    %c0_i32 = arith.constant 0 : i32
    %c0_i32_0 = arith.constant 0 : i32
    %c0_i32_1 = arith.constant 0 : i32
    %c0_i32_2 = arith.constant 0 : i32
    %c0_i32_3 = arith.constant 0 : i32
    return %c0_i32, %c0_i32_0, %c0_i32_1, %c0_i32_2, %arg0 : i32, i32, i32, i32, i32
  }
}

</mosaic_0001>

<bundles_post_ra>
// kernel: tpu_custom_call.1
= control target key start
LH: loop header
LB: loop body
LE: loop exit
PB: predicated region body
PF: predicated region fallthrough
CT: control target
= control target key end

     0   :  { %s639_s12 = smov [#allocation4]   ;;  %s1380_s0 = inlined_call_operand.vmem [shape: f32[16], index: 0, kind: input, shape index: {}]   ;;  %s1381_s1 = inlined_call_operand.vmem [shape: f32[4,4,2], index: 1, kind: input, shape index: {}]   ;;  %s1382_s2 = inlined_call_operand.vmem [shape: f32[8,4,2,2], index: 2, kind: output, shape index: {}]  }
   0x1   :  { %s8_s11 = sshll.u32 %s1380_s0, 4  ;;  %s9_s11 = int_to_ptr.vmem [resolvable:$true] %s8_s11 }
   0x2   :  { %11 = dma.vmem_to_smem %s9_s11, 16, %s639_s12, [#allocation3] }
   0x3   :  { %637 = dma.done.wait [#allocation3], 16 }
   0x4   :  { %638 = vsyncadd [#allocation3], 4294967280 }
   0x5   :  { %14 = sfence }
   0x6   :  { %v17_v0 = vld [vmem:[%s1381_s1] sm:$0xf]  ;;  %vm22_vm0 = vcmask 11264   ;;  %v18_v1 = vld [vmem:[%s1381_s1 + $0x4] sm:$0xf]  ;;  %s667_s0 = sld [smem:[#allocation4 + $0xf]] }
   0x7   :  { %23 = vst.msk [vmem:[#allocation2 + $0x44] sm:$0xf] %vm22_vm0, %v17_v0  ;;  %v19_v2 = vld [vmem:[%s1381_s1 + $0x8] sm:$0xf]  ;;  %s673_s19 = sld [smem:[#allocation4 + $0xd]]  ;;  %vm460_vm1 = vcmask 8192  }
   0x8   :  { %27 = vst.msk [vmem:[#allocation2 + $0x4] sm:$0xf] %vm22_vm0, %v17_v0  ;;  %v20_v3 = vld [vmem:[%s1381_s1 + $0xc] sm:$0xf]  ;;  %s679_s22 = sld [smem:[#allocation4 + $0xe]] }
   0x9   :  { %28 = vst.msk [vmem:[#allocation2 + $0x14] sm:$0xf] %vm22_vm0, %v17_v0  ;;  %s682_s23 = sld [smem:[#allocation4 + $0xc]] }
   0xa   :  { %29 = vst.msk [vmem:[#allocation2 + $0x24] sm:$0xf] %vm22_vm0, %v17_v0  ;;  %s685_s24 = sld [smem:[#allocation4 + $0xb]] }
   0xb   :  { %30 = vst.msk [vmem:[#allocation2 + $0x34] sm:$0xf] %vm22_vm0, %v17_v0  ;;  %s688_s25 = sld [smem:[#allocation4 + $0x9]] }
   0xc   :  { %24 = vst.msk [vmem:[#allocation2 + $0x54] sm:$0xf] %vm22_vm0, %v18_v1  ;;  %s692_s1 = sld [smem:[#allocation4 + $0x1]]  ;;  %v706_v19 = vstv %s667_s0 }
   0xd   :  { %25 = vst.msk [vmem:[#allocation2 + $0x64] sm:$0xf] %vm22_vm0, %v19_v2  ;;  %v709_v20 = vstv %s673_s19  ;;  %s786_s26 = sld [smem:[#allocation4 + $0x3]] }
   0xe   :  { %26 = vst.msk [vmem:[#allocation2 + $0x74] sm:$0xf] %vm22_vm0, %v20_v3  ;;  %v603_v4 = vld [vmem:[#allocation2 + $0x44] ss:$0 sm:$0xff]  ;;  %v611_v12 = vld [vmem:[#allocation2 + $0x47] ss:$0 sm:$0xff]  ;;  %v715_v25 = vstv %s679_s22 }
   0xf   :  { %32 = vst.msk [vmem:[#allocation2 + $0x84] sm:$0xf] %vm22_vm0, %v20_v3  ;;  %v727_v35 = vstv %s682_s23  ;;  %s791_s27 = sld [smem:[#allocation4 + $0x5]] }
  0x10   :  { %33 = vst.msk [vmem:[#allocation2 + $0x94] sm:$0xf] %vm22_vm0, %v20_v3  ;;  %v730_v38 = vstv %s685_s24  ;;  %s801_s28 = sld [smem:[#allocation4 + $0x7]] }
  0x11   :  { %34 = vst.msk [vmem:[#allocation2 + $0xa4] sm:$0xf] %vm22_vm0, %v20_v3  ;;  %v601_v5 = vld [vmem:[#allocation2 + $0x24] ss:$0 sm:$0xff]  ;;  %v609_v13 = vld [vmem:[#allocation2 + $0x27] ss:$0 sm:$0xff]  ;;  %v738_v44 = vstv %s688_s25 }
  0x12   :  { %35 = vst.msk [vmem:[#allocation2 + $0xb4] sm:$0xf] %vm22_vm0, %v20_v3  ;;  %v602_v6 = vld [vmem:[#allocation2 + $0x34] ss:$0 sm:$0xff]  ;;  %v610_v14 = vld [vmem:[#allocation2 + $0x37] ss:$0 sm:$0xff]  ;;  %v741_v45 = vstv %s692_s1 }
  0x13   :  { %62 = vst.msk [vmem:[#allocation2 + $0x20] sm:$0xf] %vm22_vm0, %v601_v5  ;;  %v604_v7 = vld [vmem:[#allocation2 + $0x54] ss:$0 sm:$0xff]  ;;  %v612_v15 = vld [vmem:[#allocation2 + $0x57] ss:$0 sm:$0xff] }
  0x14   :  { %63 = vst.msk [vmem:[#allocation2 + $0x30] sm:$0xf] %vm22_vm0, %v602_v6  ;;  %v605_v8 = vld [vmem:[#allocation2 + $0x64] ss:$0 sm:$0xff]  ;;  %v613_v16 = vld [vmem:[#allocation2 + $0x67] ss:$0 sm:$0xff] }
  0x15   :  { %64 = vst.msk [vmem:[#allocation2 + $0x40] sm:$0xf] %vm22_vm0, %v603_v4  ;;  %v606_v9 = vld [vmem:[#allocation2 + $0x74] ss:$0 sm:$0xff]  ;;  %v614_v34 = vld [vmem:[#allocation2 + $0x77] ss:$0 sm:$0xff] }
  0x16   :  { %65 = vst.msk [vmem:[#allocation2 + $0x50] sm:$0xf] %vm22_vm0, %v604_v7  ;;  %v607_v10 = vld [vmem:[#allocation2 + $0x84] ss:$0 sm:$0xff]  ;;  %v615_v36 = vld [vmem:[#allocation2 + $0x87] ss:$0 sm:$0xff] }
  0x17   :  { %66 = vst.msk [vmem:[#allocation2 + $0x60] sm:$0xf] %vm22_vm0, %v605_v8  ;;  %v608_v11 = vld [vmem:[#allocation2 + $0x94] ss:$0 sm:$0xff]  ;;  %v616_v37 = vld [vmem:[#allocation2 + $0x97] ss:$0 sm:$0xff] }
  0x18   :  { %67 = vst.msk [vmem:[#allocation2 + $0x70] sm:$0xf] %vm22_vm0, %v606_v9  ;;  %s811_s29 = sld [smem:[#allocation4]] }
  0x19   :  { %68 = vst.msk [vmem:[#allocation2 + $0x80] sm:$0xf] %vm22_vm0, %v607_v10  ;;  %s597_s30 = sld [smem:[#allocation4 + $0x2]] }
  0x1a   :  { %69 = vst.msk [vmem:[#allocation2 + $0x90] sm:$0xf] %vm22_vm0, %v608_v11  ;;  %v108_v42 = vld [vmem:[#allocation2 + $0x22] sm:$0x1f]  ;;  %s598_s3 = sld [smem:[#allocation4 + $0x4]] }
  0x1b   :  { %98 = vst.msk [vmem:[#allocation2 + $0x28] sm:$0xf] %vm22_vm0, %v609_v13  ;;  %v109_v43 = vld [vmem:[#allocation2 + $0x32] sm:$0x1f]  ;;  %v118_v48 = vmul.f32 %v706_v19, %v108_v42  ;;  %v126_v50 = vld [vmem:[#allocation2 + $0x23] sm:$0x1f] }
  0x1c   :  { %v110_v17 = vld [vmem:[#allocation2 + $0x42] sm:$0x1f]  ;;  %99 = vst.msk [vmem:[#allocation2 + $0x38] sm:$0xf] %vm22_vm0, %v610_v14  ;;  %v119_v49 = vmul.f32 %v706_v19, %v109_v43  ;;  %v127_v51 = vld [vmem:[#allocation2 + $0x33] sm:$0x1f]  ;;  %v136_v55 = vmul.f32 %v709_v20, %v126_v50  ;;  %v757_v63 = vmul.f32 %v715_v25, %v126_v50 }
  0x1d   :  { %v128_v18 = vld [vmem:[#allocation2 + $0x43] sm:$0x1f]  ;;  %v111_v21 = vld [vmem:[#allocation2 + $0x52] sm:$0x1f]  ;;  %100 = vst.msk [vmem:[#allocation2 + $0x48] sm:$0xf] %vm22_vm0, %v611_v12  ;;  %v120_v28 = vmul.f32 %v706_v19, %v110_v17  ;;  %v137_v56 = vmul.f32 %v709_v20, %v127_v51  ;;  %v760_v0 = vmul.f32 %v715_v25, %v127_v51 }
  0x1e   :  { %v129_v22 = vld [vmem:[#allocation2 + $0x53] sm:$0x1f]  ;;  %v112_v23 = vld [vmem:[#allocation2 + $0x62] sm:$0x1f]  ;;  %101 = vst.msk [vmem:[#allocation2 + $0x58] sm:$0xf] %vm22_vm0, %v612_v15  ;;  %v138_v29 = vmul.f32 %v709_v20, %v128_v18  ;;  %v121_v30 = vmul.f32 %v706_v19, %v111_v21  ;;  %v744_v46 = vmul.f32 %v715_v25, %v128_v18  ;;  %v144_v4 = vadd.f32 %v136_v55, %v118_v48 }
  0x1f   :  { %v130_v24 = vld [vmem:[#allocation2 + $0x63] sm:$0x1f]  ;;  %v113_v26 = vld [vmem:[#allocation2 + $0x72] sm:$0x1f]  ;;  %102 = vst.msk [vmem:[#allocation2 + $0x68] sm:$0xf] %vm22_vm0, %v613_v16  ;;  %v139_v31 = vmul.f32 %v709_v20, %v129_v22  ;;  %v122_v32 = vmul.f32 %v706_v19, %v112_v23  ;;  %v157_v41 = vmul.f32 %v715_v25, %v129_v22  ;;  %v145_v5 = vadd.f32 %v137_v56, %v119_v49 }
  0x20   :  { %v717_v27 = vld [vmem:[#allocation2 + $0x73] sm:$0x1f]  ;;  %v140_v33 = vmul.f32 %v709_v20, %v130_v24  ;;  %v123_v39 = vmul.f32 %v706_v19, %v113_v26  ;;  %103 = vst.msk [vmem:[#allocation2 + $0x78] sm:$0xf] %vm22_vm0, %v614_v34  ;;  %v158_v47 = vmul.f32 %v715_v25, %v130_v24  ;;  %v146_v52 = vadd.f32 %v138_v29, %v120_v28  ;;  %s599_s4 = sld [smem:[#allocation4 + $0x6]] }
  0x21   :  { %v141_v40 = vmul.f32 %v709_v20, %v717_v27  ;;  %104 = vst.msk [vmem:[#allocation2 + $0x88] sm:$0xf] %vm22_vm0, %v615_v36  ;;  %v147_v53 = vadd.f32 %v139_v31, %v121_v30  ;;  %s883_s5 = sld [smem:[#allocation4 + $0xa]] }
  0x22   :  { %v148_v54 = vadd.f32 %v140_v33, %v122_v32  ;;  %105 = vst.msk [vmem:[#allocation2 + $0x98] sm:$0xf] %vm22_vm0, %v616_v37  ;;  %v162_v57 = vld [vmem:[#allocation2 + $0x24] sm:$0x1f]  ;;  %s904_s10 = sld [smem:[#allocation4 + $0x8]] }
  0x23   :  { %v163_v58 = vld [vmem:[#allocation2 + $0x34] sm:$0x1f]  ;;  %v172_v61 = vmul.f32 %v730_v38, %v162_v57  ;;  %v149_v62 = vadd.f32 %v141_v40, %v123_v39  ;;  %v773_v11 = vmul.f32 %v727_v35, %v162_v57  ;;  %v780_v15 = vld [vmem:[#allocation2 + $0x25] sm:$0x1f]  ;;  %v835_v57 = vstv %s791_s27 }
  0x24   :  { %v173_v6 = vmul.f32 %v730_v38, %v163_v58  ;;  %v767_v8 = vld [vmem:[#allocation2 + $0x44] sm:$0x1f]  ;;  %v770_v10 = vld [vmem:[#allocation2 + $0x35] sm:$0x1f]  ;;  %v776_v12 = vmul.f32 %v727_v35, %v163_v58  ;;  %v216_v34 = vmul.f32 %v738_v44, %v780_v15 }
  0x25   :  { %v165_v59 = vld [vmem:[#allocation2 + $0x54] sm:$0x1f]  ;;  %v174_v13 = vmul.f32 %v730_v38, %v767_v8  ;;  %v782_v16 = vld [vmem:[#allocation2 + $0x45] sm:$0x1f]  ;;  %v180_v22 = vadd.f32 %v172_v61, %v144_v4  ;;  %v217_v29 = vmul.f32 %v738_v44, %v770_v10 }
  0x26   :  { %v753_v60 = vld [vmem:[#allocation2 + $0x55] sm:$0x1f]  ;;  %v193_v1 = vmul.f32 %v727_v35, %v165_v59  ;;  %v166_v2 = vld [vmem:[#allocation2 + $0x64] sm:$0x1f]  ;;  %v175_v9 = vmul.f32 %v730_v38, %v165_v59  ;;  %v181_v14 = vadd.f32 %v173_v6, %v145_v5  ;;  %v218_v30 = vmul.f32 %v738_v44, %v782_v16 }
  0x27   :  { %v763_v3 = vld [vmem:[#allocation2 + $0x65] sm:$0x1f]  ;;  %v194_v7 = vmul.f32 %v727_v35, %v166_v2  ;;  %v219_v17 = vmul.f32 %v738_v44, %v753_v60  ;;  %v176_v18 = vmul.f32 %v730_v38, %v166_v2  ;;  %v795_v26 = vld [vmem:[#allocation2 + $0x74] sm:$0x1f]  ;;  %v182_v28 = vadd.f32 %v174_v13, %v146_v52 }
  0x28   :  { %v789_v21 = vadd.f32 %v193_v1, %v157_v41  ;;  %v183_v23 = vadd.f32 %v175_v9, %v147_v53  ;;  %v220_v24 = vmul.f32 %v738_v44, %v763_v3  ;;  %v803_v32 = vld [vmem:[#allocation2 + $0x75] sm:$0x1f]  ;;  %v177_v37 = vmul.f32 %v730_v38, %v795_v26  ;;  %v114_v39 = vld [vmem:[#allocation2 + $0x82] sm:$0x1f] }
  0x29   :  { %v184_v31 = vadd.f32 %v176_v18, %v148_v54  ;;  %v805_v33 = vadd.f32 %v194_v7, %v158_v47  ;;  %v815_v40 = vld [vmem:[#allocation2 + $0x83] sm:$0x1f]  ;;  %v225_v41 = vadd.f32 %v217_v29, %v181_v14  ;;  %v226_v42 = vadd.f32 %v218_v30, %v182_v28  ;;  %v115_v29 = vld [vmem:[#allocation2 + $0x92] sm:$0x1f] }
  0x2a   :  { %v809_v36 = vadd.f32 %v219_v17, %v183_v23  ;;  %v224_v47 = vadd.f32 %v216_v34, %v180_v22  ;;  %v185_v49 = vadd.f32 %v177_v37, %v149_v62  ;;  %v221_v50 = vmul.f32 %v738_v44, %v803_v32  ;;  %v823_v51 = vld [vmem:[#allocation2 + $0x84] sm:$0x1f] }
  0x2b   :  { %v817_v43 = vadd.f32 %v220_v24, %v184_v31  ;;  %v826_v52 = vstv %s786_s26  ;;  %v124_v54 = vmul.f32 %v706_v19, %v114_v39  ;;  %v142_v55 = vmul.f32 %v709_v20, %v815_v40  ;;  %v848_v4 = vld [vmem:[#allocation2 + $0x85] sm:$0x1f] }
  0x2c   :  { %v278_v48 = vmul.f32 %v741_v45, %v809_v36  ;;  %v288_v56 = vmul.f32 %v826_v52, %v226_v42  ;;  %v289_v58 = vmul.f32 %v826_v52, %v809_v36  ;;  %v839_v59 = vadd.f32 %v221_v50, %v185_v49 }
  0x2d   :  { %v279_v53 = vmul.f32 %v741_v45, %v817_v43  ;;  %v306_v61 = vmul.f32 %v835_v57, %v225_v41  ;;  %v843_v62 = vstv %s801_s28  ;;  %v307_v1 = vmul.f32 %v835_v57, %v226_v42 }
  0x2e   :  { %v178_v2 = vmul.f32 %v730_v38, %v823_v51  ;;  %v292_v5 = vadd.f32 %v288_v56, %v278_v48  ;;  %v324_v6 = vmul.f32 %v843_v62, %v224_v47  ;;  %v852_v7 = vstv %s811_s29 }
  0x2f   :  { %v293_v9 = vadd.f32 %v289_v58, %v279_v53  ;;  %v342_v13 = vmul.f32 %v852_v7, %v817_v43  ;;  %v856_v14 = vstv %s597_s30  ;;  %v325_v17 = vmul.f32 %v843_v62, %v225_v41 }
  0x30   :  { %v343_v18 = vmul.f32 %v852_v7, %v839_v59  ;;  %v310_v22 = vadd.f32 %v306_v61, %v292_v5  ;;  %v352_v23 = vmul.f32 %v856_v14, %v809_v36  ;;  %v863_v24 = vstv %s598_s3 }
  0x31   :  { %v311_v28 = vadd.f32 %v307_v1, %v293_v9  ;;  %v865_v30 = vstv %s599_s4  ;;  %v353_v31 = vmul.f32 %v856_v14, %v817_v43  ;;  %v290_v34 = vmul.f32 %v826_v52, %v817_v43  ;;  %v892_v9 = vld [vmem:[#allocation2 + $0x93] sm:$0x1f] }
  0x32   :  { %v222_v37 = vmul.f32 %v738_v44, %v848_v4  ;;  %v873_v39 = vadd.f32 %v324_v6, %v310_v22  ;;  %v356_v47 = vadd.f32 %v352_v23, %v342_v13  ;;  %v370_v48 = vmul.f32 %v863_v24, %v226_v42  ;;  %v902_v22 = vld [vmem:[#allocation2 + $0x94] sm:$0x1f] }
  0x33   :  { %v876_v49 = vadd.f32 %v325_v17, %v311_v28  ;;  %v357_v50 = vadd.f32 %v353_v31, %v343_v18  ;;  %v371_v53 = vmul.f32 %v863_v24, %v809_v36  ;;  %v280_v56 = vmul.f32 %v741_v45, %v839_v59  ;;  %v912_v28 = vld [vmem:[#allocation2 + $0x95] sm:$0x1f] }
  0x34   :  { %v125_v58 = vmul.f32 %v706_v19, %v115_v29  ;;  %461 = vst.msk [vmem:[%s1382_s2] sm:$0x1] %vm460_vm1, %v873_v39  ;;  %v374_v61 = vadd.f32 %v370_v48, %v356_v47  ;;  %v388_v1 = vmul.f32 %v865_v30, %v225_v41  ;;  %v389_v5 = vmul.f32 %v865_v30, %v226_v42 }
  0x35   :  { %v150_v6 = vadd.f32 %v142_v55, %v124_v54  ;;  %469 = vst.msk [vmem:[%s1382_s2 + $0x10] sm:$0x1] %vm460_vm1, %v876_v49  ;;  %v375_v19 = vadd.f32 %v371_v53, %v357_v50  ;;  %v294_v13 = vadd.f32 %v290_v34, %v280_v56  ;;  %v308_v17 = vmul.f32 %v835_v57, %v809_v36 }
  0x36   :  { %v326_v18 = vmul.f32 %v843_v62, %v226_v42  ;;  %v906_v41 = vadd.f32 %v388_v1, %v374_v61  ;;  %v354_v55 = vmul.f32 %v856_v14, %v839_v59  ;;  %v372_v23 = vmul.f32 %v863_v24, %v817_v43 }
  0x37   :  { %v186_v54 = vadd.f32 %v178_v2, %v150_v6  ;;  %v914_v29 = vadd.f32 %v389_v5, %v375_v19  ;;  %v312_v31 = vadd.f32 %v308_v17, %v294_v13  ;;  %v390_v42 = vmul.f32 %v865_v30, %v809_v36 }
  0x38   :  { %v143_v34 = vmul.f32 %v709_v20, %v892_v9  ;;  %465 = vst.msk [vmem:[%s1382_s2 + $0x8] sm:$0x1] %vm460_vm1, %v906_v41  ;;  %v291_v47 = vmul.f32 %v826_v52, %v839_v59  ;;  %v309_v48 = vmul.f32 %v835_v57, %v817_v43  ;;  %v179_v50 = vmul.f32 %v730_v38, %v902_v22 }
  0x39   :  { %v230_v2 = vadd.f32 %v222_v37, %v186_v54  ;;  %473 = vst.msk [vmem:[%s1382_s2 + $0x18] sm:$0x1] %vm460_vm1, %v914_v29  ;;  %v936_v20 = vadd.f32 %v326_v18, %v312_v31  ;;  %v223_v37 = vmul.f32 %v738_v44, %v912_v28  ;;  %v192_v56 = vmul.f32 %v727_v35, %v767_v8  ;;  %v253_v31 = vld [vmem:[#allocation2 + $0x56] sm:$0x1f] }
  0x3a   :  { %v151_v53 = vadd.f32 %v143_v34, %v125_v58  ;;  %v198_v5 = vadd.f32 %v773_v11, %v757_v63  ;;  %v199_v8 = vadd.f32 %v776_v12, %v760_v0  ;;  %v956_v6 = vstv %s883_s5  ;;  %v251_v0 = vld [vmem:[#allocation2 + $0x36] sm:$0x1f]  ;;  %v252_v12 = vld [vmem:[#allocation2 + $0x46] sm:$0x1f] }
  0x3b   :  { %v344_v61 = vmul.f32 %v852_v7, %v230_v2  ;;  %v281_v1 = vmul.f32 %v741_v45, %v230_v2  ;;  %v355_v38 = vmul.f32 %v856_v14, %v230_v2  ;;  %477 = vst.msk [vmem:[%s1382_s2 + $0x20] sm:$0x1] %vm460_vm1, %v936_v20  ;;  %v200_v58 = vadd.f32 %v192_v56, %v744_v46 }
  0x3c   :  { %v187_v44 = vadd.f32 %v179_v50, %v151_v53  ;;  %v234_v17 = vmul.f32 %v956_v6, %v780_v15  ;;  %v235_v63 = vmul.f32 %v956_v6, %v770_v10  ;;  %v236_v18 = vmul.f32 %v956_v6, %v782_v16  ;;  %v250_v53 = vld [vmem:[#allocation2 + $0x26] sm:$0x1f] }
  0x3d   :  { %v358_v19 = vadd.f32 %v354_v55, %v344_v61  ;;  %v295_v13 = vadd.f32 %v291_v47, %v281_v1  ;;  %v237_v54 = vmul.f32 %v956_v6, %v753_v60  ;;  %v967_v46 = vstv %s904_s10 }
  0x3e   :  { %v231_v11 = vadd.f32 %v223_v37, %v187_v44  ;;  %v327_v15 = vmul.f32 %v843_v62, %v809_v36  ;;  %v243_v2 = vadd.f32 %v235_v63, %v199_v8  ;;  %v242_v47 = vadd.f32 %v234_v17, %v198_v5  ;;  %v254_v37 = vld [vmem:[#allocation2 + $0x66] sm:$0x1f] }
  0x3f   :  { %v376_v55 = vadd.f32 %v372_v23, %v358_v19  ;;  %v313_v34 = vadd.f32 %v309_v48, %v295_v13  ;;  %v244_v50 = vadd.f32 %v236_v18, %v200_v58  ;;  %v245_v16 = vadd.f32 %v237_v54, %v789_v21 }
  0x40   :  { %v345_v10 = vmul.f32 %v852_v7, %v231_v11  ;;  %v261_v61 = vmul.f32 %v967_v46, %v251_v0  ;;  %v262_v23 = vmul.f32 %v967_v46, %v252_v12  ;;  %v373_v36 = vmul.f32 %v863_v24, %v839_v59 }
  0x41   :  { %v973_v60 = vadd.f32 %v390_v42, %v376_v55  ;;  %v975_v56 = vadd.f32 %v327_v15, %v313_v34  ;;  %v263_v1 = vmul.f32 %v967_v46, %v253_v31  ;;  %v238_v5 = vmul.f32 %v956_v6, %v763_v3  ;;  %v255_v55 = vld [vmem:[#allocation2 + $0x76] sm:$0x1f] }
  0x42   :  { %v359_v48 = vadd.f32 %v355_v38, %v345_v10  ;;  %v391_v21 = vmul.f32 %v865_v30, %v817_v43  ;;  %v260_v42 = vmul.f32 %v967_v46, %v250_v53  ;;  %v269_v38 = vadd.f32 %v261_v61, %v243_v2 }
  0x43   :  { %481 = vst.msk [vmem:[%s1382_s2 + $0x28] sm:$0x1] %vm460_vm1, %v973_v60  ;;  %v270_v44 = vadd.f32 %v262_v23, %v244_v50  ;;  %v997_v59 = vadd.f32 %v263_v1, %v245_v16  ;;  %v246_v8 = vadd.f32 %v238_v5, %v805_v33  ;;  %v264_v58 = vmul.f32 %v967_v46, %v254_v37 }
  0x44   :  { %485 = vst.msk [vmem:[%s1382_s2 + $0x30] sm:$0x1] %vm460_vm1, %v975_v56  ;;  %v377_v3 = vadd.f32 %v373_v36, %v359_v48  ;;  %v268_v19 = vadd.f32 %v260_v42, %v242_v47  ;;  %v159_v13 = vmul.f32 %v715_v25, %v717_v27  ;;  %v195_v54 = vmul.f32 %v727_v35, %v795_v26 }
  0x45   :  { %v296_v43 = vmul.f32 %v826_v52, %v270_v44  ;;  %v282_v63 = vmul.f32 %v741_v45, %v997_v59  ;;  %v1008_v11 = vadd.f32 %v264_v58, %v246_v8  ;;  %v360_v18 = vmul.f32 %v856_v14, %v997_v59 }
  0x46   :  { %v1004_v17 = vadd.f32 %v391_v21, %v377_v3  ;;  %v297_v33 = vmul.f32 %v826_v52, %v997_v59  ;;  %v314_v0 = vmul.f32 %v835_v57, %v269_v38  ;;  %v332_v34 = vmul.f32 %v843_v62, %v268_v19  ;;  %v256_v3 = vld [vmem:[#allocation2 + $0x86] sm:$0x1f] }
  0x47   :  { %v300_v27 = vadd.f32 %v296_v43, %v282_v63  ;;  %v346_v12 = vmul.f32 %v852_v7, %v1008_v11  ;;  %v283_v31 = vmul.f32 %v741_v45, %v1008_v11  ;;  %v378_v26 = vmul.f32 %v863_v24, %v270_v44 }
  0x48   :  { %489 = vst.msk [vmem:[%s1382_s2 + $0x38] sm:$0x1] %vm460_vm1, %v1004_v17  ;;  %v203_v15 = vadd.f32 %v195_v54, %v159_v13  ;;  %v239_v2 = vmul.f32 %v956_v6, %v803_v32  ;;  %v315_v16 = vmul.f32 %v835_v57, %v270_v44  ;;  %v396_v53 = vmul.f32 %v865_v30, %v269_v38 }
  0x49   :  { %v318_v10 = vadd.f32 %v314_v0, %v300_v27  ;;  %v364_v47 = vadd.f32 %v360_v18, %v346_v12  ;;  %v301_v50 = vadd.f32 %v297_v33, %v283_v31  ;;  %v333_v37 = vmul.f32 %v843_v62, %v269_v38 }
  0x4a   :  { %v247_v61 = vadd.f32 %v239_v2, %v203_v15  ;;  %v265_v23 = vmul.f32 %v967_v46, %v255_v55  ;;  %v160_v5 = vmul.f32 %v715_v25, %v815_v40  ;;  %v361_v21 = vmul.f32 %v856_v14, %v1008_v11  ;;  %v257_v2 = vld [vmem:[#allocation2 + $0x96] sm:$0x1f] }
  0x4b   :  { %v1034_v48 = vadd.f32 %v332_v34, %v318_v10  ;;  %v382_v36 = vadd.f32 %v378_v26, %v364_v47  ;;  %v319_v1 = vadd.f32 %v315_v16, %v301_v50  ;;  %v298_v42 = vmul.f32 %v826_v52, %v1008_v11 }
  0x4c   :  { %v1038_v32 = vadd.f32 %v265_v23, %v247_v61  ;;  %v196_v38 = vmul.f32 %v727_v35, %v823_v51  ;;  %v240_v51 = vmul.f32 %v956_v6, %v848_v4  ;;  %v379_v13 = vmul.f32 %v863_v24, %v997_v59 }
  0x4d   :  { %549 = vst.msk [vmem:[%s1382_s2 + $0x1] sm:$0x1] %vm460_vm1, %v1034_v48  ;;  %v1051_v8 = vadd.f32 %v396_v53, %v382_v36  ;;  %v1053_v40 = vadd.f32 %v333_v37, %v319_v1  ;;  %v316_v63 = vmul.f32 %v835_v57, %v997_v59  ;;  %v266_v18 = vmul.f32 %v967_v46, %v256_v3 }
  0x4e   :  { %v347_v58 = vmul.f32 %v852_v7, %v1038_v32  ;;  %v284_v19 = vmul.f32 %v741_v45, %v1038_v32  ;;  %v204_v43 = vadd.f32 %v196_v38, %v160_v5  ;;  %v161_v33 = vmul.f32 %v715_v25, %v892_v9 }
  0x4f   :  { %553 = vst.msk [vmem:[%s1382_s2 + $0x9] sm:$0x1] %vm460_vm1, %v1051_v8  ;;  %v197_v0 = vmul.f32 %v727_v35, %v902_v22  ;;  %v397_v12 = vmul.f32 %v865_v30, %v270_v44  ;;  %v334_v31 = vmul.f32 %v843_v62, %v270_v44  ;;  %v362_v55 = vmul.f32 %v856_v14, %v1038_v32 }
  0x50   :  { %557 = vst.msk [vmem:[%s1382_s2 + $0x11] sm:$0x1] %vm460_vm1, %v1053_v40  ;;  %v365_v4 = vadd.f32 %v361_v21, %v347_v58  ;;  %v302_v54 = vadd.f32 %v298_v42, %v284_v19  ;;  %v248_v27 = vadd.f32 %v240_v51, %v204_v43  ;;  %v299_v25 = vmul.f32 %v826_v52, %v1038_v32 }
  0x51   :  { %v205_v15 = vadd.f32 %v197_v0, %v161_v33  ;;  %v241_v10 = vmul.f32 %v956_v6, %v912_v28  ;;  %v412_v35 = vrot.slane %v873_v39, 1  ;;  %v413_v22 = vrot.slane %v873_v39, 2 }
  0x52   :  { %v383_v9 = vadd.f32 %v379_v13, %v365_v4  ;;  %v320_v34 = vadd.f32 %v316_v63, %v302_v54  ;;  %v274_v26 = vadd.f32 %v266_v18, %v248_v27  ;;  %v380_v16 = vmul.f32 %v863_v24, %v1008_v11 }
  0x53   :  { %v249_v53 = vadd.f32 %v241_v10, %v205_v15  ;;  %v267_v37 = vmul.f32 %v967_v46, %v257_v2  ;;  %462 = vst.msk [vmem:[%s1382_s2 + $0x2] sm:$0x1] %vm460_vm1, %v412_v35  ;;  %v414_v28 = vrot.slane %v873_v39, 3  ;;  %v317_v61 = vmul.f32 %v835_v57, %v1008_v11 }
  0x54   :  { %v1090_v47 = vadd.f32 %v397_v12, %v383_v9  ;;  %v1092_v44 = vadd.f32 %v334_v31, %v320_v34  ;;  %v348_v50 = vmul.f32 %v852_v7, %v274_v26  ;;  %v285_v52 = vmul.f32 %v741_v45, %v274_v26  ;;  %463 = vst.msk [vmem:[%s1382_s2 + $0x4] sm:$0x1] %vm460_vm1, %v413_v22 }
  0x55   :  { %v415_v46 = vrot.slane %v906_v41, 1  ;;  %v275_v39 = vadd.f32 %v267_v37, %v249_v53  ;;  %v363_v23 = vmul.f32 %v856_v14, %v274_v26  ;;  %v416_v36 = vrot.slane %v906_v41, 2  ;;  %464 = vst.msk [vmem:[%s1382_s2 + $0x6] sm:$0x1] %vm460_vm1, %v414_v28 }
  0x56   :  { %561 = vst.msk [vmem:[%s1382_s2 + $0x19] sm:$0x1] %vm460_vm1, %v1090_v47  ;;  %v366_v45 = vadd.f32 %v362_v55, %v348_v50  ;;  %v303_v6 = vadd.f32 %v299_v25, %v285_v52  ;;  %v398_v5 = vmul.f32 %v865_v30, %v997_v59  ;;  %v335_v57 = vmul.f32 %v843_v62, %v997_v59 }
  0x57   :  { %565 = vst.msk [vmem:[%s1382_s2 + $0x21] sm:$0x1] %vm460_vm1, %v1092_v44  ;;  %v349_v42 = vmul.f32 %v852_v7, %v275_v39  ;;  %v417_v62 = vrot.slane %v906_v41, 3  ;;  %v381_v7 = vmul.f32 %v863_v24, %v1038_v32  ;;  %v418_v3 = vrot.slane %v876_v49, 1 }
  0x58   :  { %v384_v1 = vadd.f32 %v380_v16, %v366_v45  ;;  %v321_v21 = vadd.f32 %v317_v61, %v303_v6  ;;  %466 = vst.msk [vmem:[%s1382_s2 + $0xa] sm:$0x1] %vm460_vm1, %v415_v46  ;;  %v419_v58 = vrot.slane %v876_v49, 2  ;;  %v399_v41 = vmul.f32 %v865_v30, %v1008_v11 }
  0x59   :  { %v367_v59 = vadd.f32 %v363_v23, %v349_v42  ;;  %467 = vst.msk [vmem:[%s1382_s2 + $0xc] sm:$0x1] %vm460_vm1, %v416_v36  ;;  %v420_v32 = vrot.slane %v876_v49, 3  ;;  %v421_v43 = vrot.slane %v914_v29, 1  ;;  %v422_v30 = vrot.slane %v914_v29, 2 }
  0x5a   :  { %v1132_v14 = vadd.f32 %v398_v5, %v384_v1  ;;  %v1134_v38 = vadd.f32 %v335_v57, %v321_v21  ;;  %468 = vst.msk [vmem:[%s1382_s2 + $0xe] sm:$0x1] %vm460_vm1, %v417_v62  ;;  %v423_v49 = vrot.slane %v914_v29, 3  ;;  %v424_v11 = vrot.slane %v936_v20, 1 }
  0x5b   :  { %v385_v24 = vadd.f32 %v381_v7, %v367_v59  ;;  %470 = vst.msk [vmem:[%s1382_s2 + $0x12] sm:$0x1] %vm460_vm1, %v418_v3  ;;  %v425_v51 = vrot.slane %v936_v20, 2  ;;  %v426_v29 = vrot.slane %v936_v20, 3  ;;  %v427_v13 = vrot.slane %v973_v60, 1 }
  0x5c   :  { %569 = vst.msk [vmem:[%s1382_s2 + $0x29] sm:$0x1] %vm460_vm1, %v1132_v14  ;;  %v428_v63 = vrot.slane %v973_v60, 2  ;;  %v429_v20 = vrot.slane %v973_v60, 3  ;;  %v430_v18 = vrot.slane %v975_v56, 1  ;;  %v431_v33 = vrot.slane %v975_v56, 2 }
  0x5d   :  { %573 = vst.msk [vmem:[%s1382_s2 + $0x31] sm:$0x1] %vm460_vm1, %v1134_v38  ;;  %v1166_v19 = vadd.f32 %v399_v41, %v385_v24  ;;  %v432_v60 = vrot.slane %v975_v56, 3  ;;  %v433_v4 = vrot.slane %v1004_v17, 1  ;;  %v434_v54 = vrot.slane %v1004_v17, 2 }
  0x5e   :  { %471 = vst.msk [vmem:[%s1382_s2 + $0x14] sm:$0x1] %vm460_vm1, %v419_v58  ;;  %v435_v56 = vrot.slane %v1004_v17, 3  ;;  %v501_v27 = vrot.slane %v1034_v48, 1  ;;  %v502_v0 = vrot.slane %v1034_v48, 2  ;;  %v503_v17 = vrot.slane %v1034_v48, 3 }
  0x5f   :  { %577 = vst.msk [vmem:[%s1382_s2 + $0x39] sm:$0x1] %vm460_vm1, %v1166_v19  ;;  %v504_v12 = vrot.slane %v1051_v8, 1  ;;  %v505_v31 = vrot.slane %v1051_v8, 2  ;;  %v506_v48 = vrot.slane %v1051_v8, 3  ;;  %v507_v55 = vrot.slane %v1053_v40, 1 }
  0x60   :  { %472 = vst.msk [vmem:[%s1382_s2 + $0x16] sm:$0x1] %vm460_vm1, %v420_v32  ;;  %v508_v25 = vrot.slane %v1053_v40, 2  ;;  %v509_v8 = vrot.slane %v1053_v40, 3  ;;  %v510_v9 = vrot.slane %v1090_v47, 1  ;;  %v511_v34 = vrot.slane %v1090_v47, 2 }
  0x61   :  { %474 = vst.msk [vmem:[%s1382_s2 + $0x1a] sm:$0x1] %vm460_vm1, %v421_v43  ;;  %v512_v40 = vrot.slane %v1090_v47, 3  ;;  %v513_v26 = vrot.slane %v1092_v44, 1  ;;  %v514_v15 = vrot.slane %v1092_v44, 2  ;;  %v515_v2 = vrot.slane %v1092_v44, 3 }
  0x62   :  { %475 = vst.msk [vmem:[%s1382_s2 + $0x1c] sm:$0x1] %vm460_vm1, %v422_v30  ;;  %v516_v10 = vrot.slane %v1132_v14, 1  ;;  %v517_v35 = vrot.slane %v1132_v14, 2  ;;  %v518_v22 = vrot.slane %v1132_v14, 3  ;;  %v519_v47 = vrot.slane %v1134_v38, 1 }
  0x63   :  { %476 = vst.msk [vmem:[%s1382_s2 + $0x1e] sm:$0x1] %vm460_vm1, %v423_v49  ;;  %v520_v44 = vrot.slane %v1134_v38, 2  ;;  %v521_v50 = vrot.slane %v1134_v38, 3  ;;  %v522_v52 = vrot.slane %v1166_v19, 1  ;;  %v523_v16 = vrot.slane %v1166_v19, 2 }
  0x64   :  { %478 = vst.msk [vmem:[%s1382_s2 + $0x22] sm:$0x1] %vm460_vm1, %v424_v11  ;;  %v524_v53 = vrot.slane %v1166_v19, 3 }
  0x65   :  { %479 = vst.msk [vmem:[%s1382_s2 + $0x24] sm:$0x1] %vm460_vm1, %v425_v51 }
  0x66   :  { %480 = vst.msk [vmem:[%s1382_s2 + $0x26] sm:$0x1] %vm460_vm1, %v426_v29 }
  0x67   :  { %482 = vst.msk [vmem:[%s1382_s2 + $0x2a] sm:$0x1] %vm460_vm1, %v427_v13 }
  0x68   :  { %483 = vst.msk [vmem:[%s1382_s2 + $0x2c] sm:$0x1] %vm460_vm1, %v428_v63 }
  0x69   :  { %484 = vst.msk [vmem:[%s1382_s2 + $0x2e] sm:$0x1] %vm460_vm1, %v429_v20 }
  0x6a   :  { %486 = vst.msk [vmem:[%s1382_s2 + $0x32] sm:$0x1] %vm460_vm1, %v430_v18 }
  0x6b   :  { %487 = vst.msk [vmem:[%s1382_s2 + $0x34] sm:$0x1] %vm460_vm1, %v431_v33 }
  0x6c   :  { %488 = vst.msk [vmem:[%s1382_s2 + $0x36] sm:$0x1] %vm460_vm1, %v432_v60 }
  0x6d   :  { %490 = vst.msk [vmem:[%s1382_s2 + $0x3a] sm:$0x1] %vm460_vm1, %v433_v4 }
  0x6e   :  { %491 = vst.msk [vmem:[%s1382_s2 + $0x3c] sm:$0x1] %vm460_vm1, %v434_v54 }
  0x6f   :  { %492 = vst.msk [vmem:[%s1382_s2 + $0x3e] sm:$0x1] %vm460_vm1, %v435_v56 }
  0x70   :  { %550 = vst.msk [vmem:[%s1382_s2 + $0x3] sm:$0x1] %vm460_vm1, %v501_v27 }
  0x71   :  { %551 = vst.msk [vmem:[%s1382_s2 + $0x5] sm:$0x1] %vm460_vm1, %v502_v0 }
  0x72   :  { %552 = vst.msk [vmem:[%s1382_s2 + $0x7] sm:$0x1] %vm460_vm1, %v503_v17 }
  0x73   :  { %554 = vst.msk [vmem:[%s1382_s2 + $0xb] sm:$0x1] %vm460_vm1, %v504_v12 }
  0x74   :  { %555 = vst.msk [vmem:[%s1382_s2 + $0xd] sm:$0x1] %vm460_vm1, %v505_v31 }
  0x75   :  { %556 = vst.msk [vmem:[%s1382_s2 + $0xf] sm:$0x1] %vm460_vm1, %v506_v48 }
  0x76   :  { %558 = vst.msk [vmem:[%s1382_s2 + $0x13] sm:$0x1] %vm460_vm1, %v507_v55 }
  0x77   :  { %559 = vst.msk [vmem:[%s1382_s2 + $0x15] sm:$0x1] %vm460_vm1, %v508_v25 }
  0x78   :  { %560 = vst.msk [vmem:[%s1382_s2 + $0x17] sm:$0x1] %vm460_vm1, %v509_v8 }
  0x79   :  { %562 = vst.msk [vmem:[%s1382_s2 + $0x1b] sm:$0x1] %vm460_vm1, %v510_v9 }
  0x7a   :  { %563 = vst.msk [vmem:[%s1382_s2 + $0x1d] sm:$0x1] %vm460_vm1, %v511_v34 }
  0x7b   :  { %564 = vst.msk [vmem:[%s1382_s2 + $0x1f] sm:$0x1] %vm460_vm1, %v512_v40 }
  0x7c   :  { %566 = vst.msk [vmem:[%s1382_s2 + $0x23] sm:$0x1] %vm460_vm1, %v513_v26 }
  0x7d   :  { %567 = vst.msk [vmem:[%s1382_s2 + $0x25] sm:$0x1] %vm460_vm1, %v514_v15 }
  0x7e   :  { %568 = vst.msk [vmem:[%s1382_s2 + $0x27] sm:$0x1] %vm460_vm1, %v515_v2 }
  0x7f   :  { %570 = vst.msk [vmem:[%s1382_s2 + $0x2b] sm:$0x1] %vm460_vm1, %v516_v10 }
  0x80   :  { %571 = vst.msk [vmem:[%s1382_s2 + $0x2d] sm:$0x1] %vm460_vm1, %v517_v35 }
  0x81   :  { %572 = vst.msk [vmem:[%s1382_s2 + $0x2f] sm:$0x1] %vm460_vm1, %v518_v22 }
  0x82   :  { %574 = vst.msk [vmem:[%s1382_s2 + $0x33] sm:$0x1] %vm460_vm1, %v519_v47 }
  0x83   :  { %575 = vst.msk [vmem:[%s1382_s2 + $0x35] sm:$0x1] %vm460_vm1, %v520_v44 }
  0x84   :  { %576 = vst.msk [vmem:[%s1382_s2 + $0x37] sm:$0x1] %vm460_vm1, %v521_v50 }
  0x85   :  { %578 = vst.msk [vmem:[%s1382_s2 + $0x3b] sm:$0x1] %vm460_vm1, %v522_v52 }
  0x86   :  { %579 = vst.msk [vmem:[%s1382_s2 + $0x3d] sm:$0x1] %vm460_vm1, %v523_v16 }
  0x87   :  { %580 = vst.msk [vmem:[%s1382_s2 + $0x3f] sm:$0x1] %vm460_vm1, %v524_v53 }

// kernel: tpu_custom_call.1
= control target key start
LH: loop header
LB: loop body
LE: loop exit
PB: predicated region body
PF: predicated region fallthrough
CT: control target
= control target key end

     0   :  { %s871_s12 = smov [#allocation3]   ;;  %s1572_s0 = inlined_call_operand.vmem [shape: f32[16], index: 0, kind: input, shape index: {}]   ;;  %s1573_s1 = inlined_call_operand.vmem [shape: f32[4,4,2], index: 1, kind: input, shape index: {}]   ;;  %s1574_s2 = inlined_call_operand.vmem [shape: f32[2,2,5,5,2], index: 2, kind: output, shape index: {}]  }
   0x1   :  { %s8_s11 = sshll.u32 %s1572_s0, 4  ;;  %s9_s11 = int_to_ptr.vmem [resolvable:$true] %s8_s11 }
   0x2   :  { %11 = dma.vmem_to_smem %s9_s11, 16, %s871_s12, [#allocation2] }
   0x3   :  { %869 = dma.done.wait [#allocation2], 16 }
   0x4   :  { %870 = vsyncadd [#allocation2], 4294967280 }
   0x5   :  { %14 = sfence }
   0x6   :  { %v17_v0 = vld [vmem:[%s1573_s1] sm:$0xf]  ;;  %v18_v1 = vld [vmem:[%s1573_s1 + $0x4] sm:$0xf]  ;;  %v19_v2 = vld [vmem:[%s1573_s1 + $0x8] sm:$0xf] }
   0x7   :  { %v21_v3 = vperm.slane %v17_v0, 0  ;;  %v22_v4 = vperm.slane %v18_v1, 0  ;;  %v23_v5 = vperm.slane %v19_v2, 0  ;;  %s803_s0 = sld [smem:[#allocation3 + $0x1]]  ;;  %v33_v6 = vrot.slane %v17_v0, 4 }
   0x8   :  { %v34_v7 = vrot.slane %v18_v1, 4  ;;  %v35_v8 = vrot.slane %v19_v2, 4  ;;  %vm41_vm0 = vcmask 1043456   ;;  %s804_s19 = sld [smem:[#allocation3 + $0x3]]  ;;  %v899_v9 = vperm.slane %v17_v0, 3 }
   0x9   :  { %s805_s20 = sld [smem:[#allocation3 + $0x5]]  ;;  %v901_v10 = vperm.slane %v18_v1, 3  ;;  %v20_v11 = vld [vmem:[%s1573_s1 + $0xc] sm:$0xf]  ;;  %v913_v16 = vsel %vm41_vm0, %v21_v3, %v33_v6  ;;  %v915_v17 = vperm.slane %v19_v2, 3  ;;  %vm202_vm1 = vcmask 1040384  }
   0xa   :  { %s806_s21 = sld [smem:[#allocation3 + $0x7]]  ;;  %v907_v12 = vsel %vm41_vm0, %v22_v4, %v34_v7  ;;  %v910_v13 = vsel %vm41_vm0, %v23_v5, %v35_v8  ;;  %v24_v14 = vperm.slane %v20_v11, 0  ;;  %v36_v15 = vrot.slane %v20_v11, 4 }
   0xb   :  { %s810_s24 = sld [smem:[#allocation3 + $0x9]]  ;;  %v920_v20 = vperm.slane %v20_v11, 3  ;;  %vm302_vm2 = vcmask 15365   ;;  %vm304_vm3 = vcmask 9216   ;;  %vm474_vm4 = vcmask 15366  }
   0xc   :  { %s811_s25 = sld [smem:[#allocation3 + $0xb]]  ;;  %v918_v19 = vsel %vm41_vm0, %v24_v14, %v36_v15  ;;  %vm405_vm5 = vcmask 1041408   ;;  %vm476_vm6 = vcmask 10240  }
   0xd   :  { %v47_v18 = vstv %s803_s0  ;;  %s812_s26 = sld [smem:[#allocation3 + $0xd]] }
   0xe   :  { %v48_v21 = vmul.f32 %v47_v18, %v907_v12  ;;  %v923_v22 = vstv %s804_s19  ;;  %s813_s1 = sld [smem:[#allocation3 + $0xf]]  ;;  %v49_v23 = vmul.f32 %v47_v18, %v901_v10  ;;  %v50_v24 = vmul.f32 %v47_v18, %v910_v13 }
   0xf   :  { %v56_v25 = vmul.f32 %v923_v22, %v913_v16  ;;  %v929_v26 = vstv %s805_s20  ;;  %v57_v27 = vmul.f32 %v923_v22, %v899_v9  ;;  %v58_v28 = vmul.f32 %v923_v22, %v907_v12  ;;  %s1043_s5 = sld [smem:[#allocation3 + $0x8]] }
  0x10   :  { %v74_v29 = vmul.f32 %v929_v26, %v913_v16  ;;  %v937_v30 = vstv %s806_s21  ;;  %v75_v31 = vmul.f32 %v929_v26, %v899_v9  ;;  %v51_v32 = vmul.f32 %v47_v18, %v915_v17  ;;  %s1072_s8 = sld [smem:[#allocation3 + $0xa]] }
  0x11   :  { %v64_v33 = vadd.f32 %v56_v25, %v48_v21  ;;  %v94_v34 = vmul.f32 %v937_v30, %v913_v16  ;;  %v944_v35 = vstv %s810_s24  ;;  %v65_v36 = vadd.f32 %v57_v27, %v49_v23  ;;  %s1077_s9 = sld [smem:[#allocation3 + $0xc]] }
  0x12   :  { %v946_v37 = vstv %s811_s25  ;;  %v950_v38 = vmul.f32 %v937_v30, %v899_v9  ;;  %v66_v39 = vadd.f32 %v58_v28, %v50_v24  ;;  %v59_v40 = vmul.f32 %v923_v22, %v901_v10  ;;  %s1087_s12 = sld [smem:[#allocation3 + $0xe]] }
  0x13   :  { %v82_v41 = vadd.f32 %v74_v29, %v64_v33  ;;  %v954_v42 = vstv %s812_s26  ;;  %v83_v43 = vadd.f32 %v75_v31, %v65_v36  ;;  %v52_v44 = vmul.f32 %v47_v18, %v918_v19  ;;  %s1203_s26 = sld [smem:[#allocation3]] }
  0x14   :  { %v957_v45 = vstv %s813_s1  ;;  %v84_v46 = vadd.f32 %v74_v29, %v66_v39  ;;  %v67_v47 = vadd.f32 %v59_v40, %v51_v32  ;;  %v60_v48 = vmul.f32 %v923_v22, %v910_v13  ;;  %s1211_s28 = sld [smem:[#allocation3 + $0x2]] }
  0x15   :  { %v961_v49 = vadd.f32 %v94_v34, %v82_v41  ;;  %v964_v50 = vadd.f32 %v950_v38, %v83_v43  ;;  %v76_v51 = vmul.f32 %v929_v26, %v907_v12  ;;  %v969_v52 = vmul.f32 %v47_v18, %v920_v20  ;;  %s1216_s29 = sld [smem:[#allocation3 + $0x4]] }
  0x16   :  { %v971_v53 = vadd.f32 %v94_v34, %v84_v46  ;;  %v85_v54 = vadd.f32 %v75_v31, %v67_v47  ;;  %v68_v55 = vadd.f32 %v60_v48, %v52_v44  ;;  %v61_v56 = vmul.f32 %v923_v22, %v915_v17  ;;  %s1223_s30 = sld [smem:[#allocation3 + $0x6]] }
  0x17   :  { %v170_v57 = vmul.f32 %v944_v35, %v961_v49  ;;  %v182_v58 = vmul.f32 %v946_v37, %v961_v49  ;;  %v240_v59 = vmul.f32 %v954_v42, %v961_v49  ;;  %v272_v60 = vmul.f32 %v957_v45, %v961_v49 }
  0x18   :  { %v171_v61 = vmul.f32 %v944_v35, %v964_v50  ;;  %v183_v62 = vmul.f32 %v946_v37, %v964_v50  ;;  %v172_v63 = vmul.f32 %v944_v35, %v971_v53  ;;  %v184_v0 = vmul.f32 %v946_v37, %v971_v53 }
  0x19   :  { %v203_v1 = vrot.slane %v182_v58, 7  ;;  %v250_v2 = vrot.slane %v240_v59, 6  ;;  %v282_v3 = vrot.slane %v272_v60, 5  ;;  %v241_v4 = vmul.f32 %v954_v42, %v971_v53 }
  0x1a   :  { %v204_v5 = vrot.slane %v183_v62, 7  ;;  %v206_v6 = vrot.slane %v184_v0, 7  ;;  %v273_v7 = vmul.f32 %v957_v45, %v971_v53  ;;  %v996_v8 = vadd.f32 %v950_v38, %v85_v54 }
  0x1b   :  { %v228_v11 = vadd.f32 %v203_v1, %v170_v57  ;;  %v251_v14 = vrot.slane %v241_v4, 6  ;;  %v86_v15 = vadd.f32 %v76_v51, %v68_v55  ;;  %v69_v18 = vadd.f32 %v61_v56, %v969_v52 }
  0x1c   :  { %v205_v21 = vsel %vm202_vm1, %v203_v1, %v204_v5  ;;  %v230_v23 = vadd.f32 %v206_v6, %v172_v63  ;;  %v283_v24 = vrot.slane %v273_v7, 5  ;;  %v173_v25 = vmul.f32 %v944_v35, %v996_v8 }
  0x1d   :  { %v260_v27 = vadd.f32 %v250_v2, %v228_v11  ;;  %v229_v28 = vadd.f32 %v205_v21, %v171_v61  ;;  %v185_v29 = vmul.f32 %v946_v37, %v996_v8  ;;  %v1004_v31 = vadd.f32 %v94_v34, %v86_v15 }
  0x1e   :  { %v262_v32 = vadd.f32 %v251_v14, %v230_v23  ;;  %v77_v33 = vmul.f32 %v929_v26, %v901_v10  ;;  %v62_v36 = vmul.f32 %v923_v22, %v918_v19  ;;  %v78_v39 = vmul.f32 %v929_v26, %v910_v13 }
  0x1f   :  { %v292_v40 = vadd.f32 %v282_v3, %v260_v27  ;;  %v261_v41 = vadd.f32 %v250_v2, %v229_v28  ;;  %v207_v43 = vrot.slane %v185_v29, 7  ;;  %v174_v46 = vmul.f32 %v944_v35, %v1004_v31 }
  0x20   :  { %v294_v47 = vadd.f32 %v283_v24, %v262_v32  ;;  %v186_v34 = vmul.f32 %v946_v37, %v1004_v31  ;;  %v242_v48 = vmul.f32 %v954_v42, %v1004_v31  ;;  %v1020_v51 = vmul.f32 %v957_v45, %v1004_v31 }
  0x21   :  { %303 = vst.msk [vmem:[%s1574_s2 - $0x5] sm:$0xe0] %vm302_vm2, %v292_v40  ;;  %v293_v54 = vadd.f32 %v282_v3, %v261_v41  ;;  %v208_v55 = vsel %vm202_vm1, %v206_v6, %v207_v43  ;;  %v87_v56 = vadd.f32 %v77_v33, %v69_v18  ;;  %v70_v57 = vadd.f32 %v62_v36, %v52_v44 }
  0x22   :  { %306 = vst.msk [vmem:[%s1574_s2 + $0x3] sm:$0xe0] %vm302_vm2, %v294_v47  ;;  %v231_v58 = vadd.f32 %v208_v55, %v173_v25  ;;  %v209_v59 = vrot.slane %v186_v34, 7  ;;  %v252_v60 = vrot.slane %v242_v48, 6  ;;  %v284_v61 = vrot.slane %v1020_v51, 5 }
  0x23   :  { %305 = vst.msk [vmem:[%s1574_s2 + $0x3] sm:$0x3] %vm304_vm3, %v293_v54  ;;  %v1037_v62 = vadd.f32 %v950_v38, %v87_v56  ;;  %v88_v63 = vadd.f32 %v78_v39, %v70_v57  ;;  %v96_v44 = vmul.f32 %v937_v30, %v907_v12  ;;  %v63_v0 = vmul.f32 %v923_v22, %v920_v20 }
  0x24   :  { %v263_v1 = vadd.f32 %v251_v14, %v231_v58  ;;  %v232_v2 = vadd.f32 %v209_v59, %v174_v46  ;;  %v79_v3 = vmul.f32 %v929_v26, %v915_v17  ;;  %v97_v4 = vmul.f32 %v937_v30, %v901_v10 }
  0x25   :  { %v175_v38 = vmul.f32 %v944_v35, %v1037_v62  ;;  %v187_v5 = vmul.f32 %v946_v37, %v1037_v62  ;;  %v1053_v6 = vadd.f32 %v96_v44, %v88_v63  ;;  %v71_v22 = vadd.f32 %v63_v0, %v969_v52 }
  0x26   :  { %v295_v7 = vadd.f32 %v283_v24, %v263_v1  ;;  %v264_v11 = vadd.f32 %v252_v60, %v232_v2  ;;  %v80_v14 = vmul.f32 %v929_v26, %v918_v19  ;;  %v98_v15 = vmul.f32 %v937_v30, %v910_v13 }
  0x27   :  { %v210_v18 = vrot.slane %v187_v5, 7  ;;  %v176_v21 = vmul.f32 %v944_v35, %v1053_v6  ;;  %v188_v23 = vmul.f32 %v946_v37, %v1053_v6  ;;  %v243_v25 = vmul.f32 %v954_v42, %v1053_v6 }
  0x28   :  { %307 = vst.msk [vmem:[%s1574_s2 + $0xb] sm:$0x3] %vm304_vm3, %v295_v7  ;;  %v296_v52 = vadd.f32 %v284_v61, %v264_v11  ;;  %v275_v24 = vmul.f32 %v957_v45, %v1053_v6  ;;  %v89_v27 = vadd.f32 %v79_v3, %v71_v22  ;;  %v90_v28 = vadd.f32 %v80_v14, %v70_v57 }
  0x29   :  { %v211_v29 = vsel %vm202_vm1, %v209_v59, %v210_v18  ;;  %v212_v32 = vrot.slane %v188_v23, 7  ;;  %v253_v33 = vrot.slane %v243_v25, 6  ;;  %v81_v36 = vmul.f32 %v929_v26, %v920_v20 }
  0x2a   :  { %308 = vst.msk [vmem:[%s1574_s2 + $0xb] sm:$0xe0] %vm302_vm2, %v296_v52  ;;  %v233_v39 = vadd.f32 %v211_v29, %v175_v38  ;;  %v285_v40 = vrot.slane %v275_v24, 5  ;;  %v1083_v41 = vadd.f32 %v97_v4, %v89_v27  ;;  %v1085_v43 = vadd.f32 %v98_v15, %v90_v28 }
  0x2b   :  { %v234_v46 = vadd.f32 %v212_v32, %v176_v21  ;;  %v91_v47 = vadd.f32 %v81_v36, %v71_v22  ;;  %v99_v26 = vmul.f32 %v937_v30, %v915_v17  ;;  %v1092_v34 = vstv %s1043_s5 }
  0x2c   :  { %v265_v48 = vadd.f32 %v252_v60, %v233_v39  ;;  %v177_v51 = vmul.f32 %v944_v35, %v1083_v41  ;;  %v189_v54 = vmul.f32 %v946_v37, %v1083_v41  ;;  %v178_v55 = vmul.f32 %v944_v35, %v1085_v43 }
  0x2d   :  { %v266_v56 = vadd.f32 %v253_v33, %v234_v46  ;;  %v190_v57 = vmul.f32 %v946_v37, %v1085_v43  ;;  %v244_v30 = vmul.f32 %v954_v42, %v1085_v43  ;;  %v276_v58 = vmul.f32 %v957_v45, %v1085_v43 }
  0x2e   :  { %v297_v59 = vadd.f32 %v284_v61, %v265_v48  ;;  %v213_v60 = vrot.slane %v189_v54, 7  ;;  %v1106_v63 = vadd.f32 %v99_v26, %v91_v47  ;;  %v316_v44 = vmul.f32 %v1092_v34, %v961_v49 }
  0x2f   :  { %v298_v0 = vadd.f32 %v285_v40, %v266_v56  ;;  %v215_v1 = vrot.slane %v190_v57, 7  ;;  %v254_v2 = vrot.slane %v244_v30, 6  ;;  %v286_v3 = vrot.slane %v276_v58, 5 }
  0x30   :  { %309 = vst.msk [vmem:[%s1574_s2 + $0x13] sm:$0x3] %vm304_vm3, %v297_v59  ;;  %v214_v4 = vsel %vm202_vm1, %v212_v32, %v213_v60  ;;  %v179_v61 = vmul.f32 %v944_v35, %v1106_v63  ;;  %v191_v38 = vmul.f32 %v946_v37, %v1106_v63  ;;  %v1120_v5 = vstv %s1072_s8 }
  0x31   :  { %310 = vst.msk [vmem:[%s1574_s2 + $0x13] sm:$0xe0] %vm302_vm2, %v298_v0  ;;  %v235_v22 = vadd.f32 %v214_v4, %v177_v51  ;;  %v236_v7 = vadd.f32 %v215_v1, %v178_v55  ;;  %v328_v11 = vmul.f32 %v1120_v5, %v961_v49  ;;  %v1129_v14 = vstv %s1077_s9 }
  0x32   :  { %v216_v15 = vrot.slane %v191_v38, 7  ;;  %v385_v18 = vmul.f32 %v1129_v14, %v961_v49  ;;  %v1134_v21 = vstv %s1087_s12  ;;  %v317_v29 = vmul.f32 %v1092_v34, %v964_v50 }
  0x33   :  { %v267_v23 = vadd.f32 %v253_v33, %v235_v22  ;;  %v268_v25 = vadd.f32 %v254_v2, %v236_v7  ;;  %v348_v52 = vrot.slane %v328_v11, 7  ;;  %v443_v24 = vmul.f32 %v1134_v21, %v961_v49 }
  0x34   :  { %v217_v27 = vsel %vm202_vm1, %v215_v1, %v216_v15  ;;  %v406_v28 = vrot.slane %v385_v18, 6  ;;  %v329_v32 = vmul.f32 %v1120_v5, %v964_v50  ;;  %v386_v48 = vmul.f32 %v1129_v14, %v964_v50 }
  0x35   :  { %v299_v36 = vadd.f32 %v285_v40, %v267_v23  ;;  %v300_v39 = vadd.f32 %v286_v3, %v268_v25  ;;  %v237_v46 = vadd.f32 %v217_v27, %v179_v61  ;;  %v373_v47 = vadd.f32 %v348_v52, %v316_v44 }
  0x36   :  { %v453_v26 = vrot.slane %v443_v24, 5  ;;  %v349_v33 = vrot.slane %v329_v32, 7  ;;  %v318_v40 = vmul.f32 %v1092_v34, %v971_v53  ;;  %v407_v50 = vrot.slane %v386_v48, 6 }
  0x37   :  { %311 = vst.msk [vmem:[%s1574_s2 + $0x1b] sm:$0x3] %vm304_vm3, %v299_v36  ;;  %v269_v49 = vadd.f32 %v254_v2, %v237_v46  ;;  %v431_v51 = vadd.f32 %v406_v28, %v373_v47  ;;  %v330_v55 = vmul.f32 %v1120_v5, %v971_v53  ;;  %v387_v56 = vmul.f32 %v1129_v14, %v971_v53 }
  0x38   :  { %312 = vst.msk [vmem:[%s1574_s2 + $0x1b] sm:$0xe0] %vm302_vm2, %v300_v39  ;;  %v350_v54 = vsel %vm202_vm1, %v348_v52, %v349_v33  ;;  %v444_v59 = vmul.f32 %v1134_v21, %v971_v53  ;;  %v408_v60 = vsel %vm405_vm5, %v406_v28, %v407_v50  ;;  %v319_v1 = vmul.f32 %v1092_v34, %v996_v8 }
  0x39   :  { %v301_v57 = vadd.f32 %v286_v3, %v269_v49  ;;  %v463_v30 = vadd.f32 %v453_v26, %v431_v51  ;;  %v374_v58 = vadd.f32 %v350_v54, %v317_v29  ;;  %v351_v44 = vrot.slane %v330_v55, 7 }
  0x3a   :  { %v409_v0 = vrot.slane %v387_v56, 6  ;;  %v454_v4 = vrot.slane %v444_v59, 5  ;;  %v331_v3 = vmul.f32 %v1120_v5, %v996_v8  ;;  %v388_v53 = vmul.f32 %v1129_v14, %v996_v8 }
  0x3b   :  { %313 = vst.msk [vmem:[%s1574_s2 + $0x23] sm:$0x3] %vm304_vm3, %v301_v57  ;;  %v432_v2 = vadd.f32 %v408_v60, %v374_v58  ;;  %v375_v61 = vadd.f32 %v351_v44, %v318_v40  ;;  %v320_v38 = vmul.f32 %v1092_v34, %v1004_v31  ;;  %v332_v22 = vmul.f32 %v1120_v5, %v1004_v31 }
  0x3c   :  { %818 = vst.msk [vmem:[%s1574_s2 + $0x22] sm:$0xc0] %vm474_vm4, %v463_v30  ;;  %v389_v7 = vmul.f32 %v1129_v14, %v1004_v31  ;;  %v352_v15 = vrot.slane %v331_v3, 7  ;;  %v410_v18 = vrot.slane %v388_v53, 6  ;;  %v445_v8 = vmul.f32 %v1134_v21, %v1004_v31 }
  0x3d   :  { %v464_v11 = vadd.f32 %v453_v26, %v432_v2  ;;  %v433_v23 = vadd.f32 %v409_v0, %v375_v61  ;;  %v354_v25 = vrot.slane %v332_v22, 7  ;;  %v321_v24 = vmul.f32 %v1092_v34, %v1037_v62 }
  0x3e   :  { %v412_v52 = vrot.slane %v389_v7, 6  ;;  %v353_v27 = vsel %vm202_vm1, %v351_v44, %v352_v15  ;;  %v411_v28 = vsel %vm405_vm5, %v409_v0, %v410_v18  ;;  %v455_v29 = vrot.slane %v445_v8, 5 }
  0x3f   :  { %819 = vst.msk [vmem:[%s1574_s2 + $0x2a] sm:$0x7] %vm476_vm6, %v464_v11  ;;  %v333_v32 = vmul.f32 %v1120_v5, %v1037_v62  ;;  %v465_v31 = vadd.f32 %v454_v4, %v433_v23  ;;  %v376_v36 = vadd.f32 %v353_v27, %v319_v1  ;;  %v377_v39 = vadd.f32 %v354_v25, %v320_v38 }
  0x40   :  { %v390_v46 = vmul.f32 %v1129_v14, %v1037_v62  ;;  %v322_v26 = vmul.f32 %v1092_v34, %v1053_v6  ;;  %v334_v33 = vmul.f32 %v1120_v5, %v1053_v6  ;;  %v391_v48 = vmul.f32 %v1129_v14, %v1053_v6 }
  0x41   :  { %v355_v47 = vrot.slane %v333_v32, 7  ;;  %820 = vst.msk [vmem:[%s1574_s2 + $0x2a] sm:$0xc0] %vm474_vm4, %v465_v31  ;;  %v434_v49 = vadd.f32 %v411_v28, %v376_v36  ;;  %v435_v51 = vadd.f32 %v412_v52, %v377_v39  ;;  %v446_v40 = vmul.f32 %v1134_v21, %v1053_v6 }
  0x42   :  { %v413_v62 = vrot.slane %v390_v46, 6  ;;  %v357_v50 = vrot.slane %v334_v33, 7  ;;  %v415_v55 = vrot.slane %v391_v48, 6  ;;  %v323_v56 = vmul.f32 %v1092_v34, %v1083_v41 }
  0x43   :  { %v356_v54 = vsel %vm202_vm1, %v354_v25, %v355_v47  ;;  %v466_v57 = vadd.f32 %v454_v4, %v434_v49  ;;  %v467_v30 = vadd.f32 %v455_v29, %v435_v51  ;;  %v456_v44 = vrot.slane %v446_v40, 5 }
  0x44   :  { %v378_v58 = vadd.f32 %v356_v54, %v321_v24  ;;  %v414_v59 = vsel %vm405_vm5, %v412_v52, %v413_v62  ;;  %v379_v60 = vadd.f32 %v357_v50, %v322_v26  ;;  %v335_v6 = vmul.f32 %v1120_v5, %v1083_v41 }
  0x45   :  { %v392_v0 = vmul.f32 %v1129_v14, %v1083_v41  ;;  %821 = vst.msk [vmem:[%s1574_s2 + $0x32] sm:$0x7] %vm476_vm6, %v466_v57  ;;  %v324_v2 = vmul.f32 %v1092_v34, %v1085_v43  ;;  %v336_v4 = vmul.f32 %v1120_v5, %v1085_v43  ;;  %v393_v3 = vmul.f32 %v1129_v14, %v1085_v43 }
  0x46   :  { %v436_v1 = vadd.f32 %v414_v59, %v378_v58  ;;  %822 = vst.msk [vmem:[%s1574_s2 + $0x32] sm:$0xc0] %vm474_vm4, %v467_v30  ;;  %v437_v41 = vadd.f32 %v415_v55, %v379_v60  ;;  %v358_v53 = vrot.slane %v335_v6, 7  ;;  %v447_v38 = vmul.f32 %v1134_v21, %v1085_v43 }
  0x47   :  { %v416_v61 = vrot.slane %v392_v0, 6  ;;  %v360_v7 = vrot.slane %v336_v4, 7  ;;  %v418_v11 = vrot.slane %v393_v3, 6  ;;  %v337_v43 = vmul.f32 %v1120_v5, %v1106_v63 }
  0x48   :  { %v468_v22 = vadd.f32 %v455_v29, %v436_v1  ;;  %v469_v15 = vadd.f32 %v456_v44, %v437_v41  ;;  %v359_v18 = vsel %vm202_vm1, %v357_v50, %v358_v53  ;;  %v457_v23 = vrot.slane %v447_v38, 5 }
  0x49   :  { %v417_v8 = vsel %vm405_vm5, %v415_v55, %v416_v61  ;;  %v380_v25 = vadd.f32 %v359_v18, %v323_v56  ;;  %v381_v52 = vadd.f32 %v360_v7, %v324_v2  ;;  %v394_v24 = vmul.f32 %v1129_v14, %v1106_v63 }
  0x4a   :  { %823 = vst.msk [vmem:[%s1574_s2 + $0x3a] sm:$0x7] %vm476_vm6, %v468_v22  ;;  %v325_v27 = vmul.f32 %v1092_v34, %v1106_v63  ;;  %v111_v28 = vstv %s1203_s26  ;;  %v117_v29 = vstv %s1211_s28  ;;  %v1260_v32 = vstv %s1216_s29 }
  0x4b   :  { %824 = vst.msk [vmem:[%s1574_s2 + $0x3a] sm:$0xc0] %vm474_vm4, %v469_v15  ;;  %v438_v31 = vadd.f32 %v417_v8, %v380_v25  ;;  %v439_v36 = vadd.f32 %v418_v11, %v381_v52  ;;  %v361_v39 = vrot.slane %v337_v43, 7  ;;  %v419_v46 = vrot.slane %v394_v24, 6 }
  0x4c   :  { %v112_v47 = vmul.f32 %v111_v28, %v910_v13  ;;  %v118_v26 = vmul.f32 %v117_v29, %v907_v12  ;;  %v132_v33 = vmul.f32 %v1260_v32, %v913_v16  ;;  %v1267_v48 = vstv %s1223_s30 }
  0x4d   :  { %v470_v49 = vadd.f32 %v456_v44, %v438_v31  ;;  %v471_v51 = vadd.f32 %v457_v23, %v439_v36  ;;  %v362_v63 = vsel %vm202_vm1, %v360_v7, %v361_v39  ;;  %v420_v62 = vsel %vm405_vm5, %v418_v11, %v419_v46 }
  0x4e   :  { %v382_v40 = vadd.f32 %v362_v63, %v325_v27  ;;  %v124_v54 = vadd.f32 %v118_v26, %v112_v47  ;;  %v150_v50 = vmul.f32 %v1267_v48, %v913_v16  ;;  %v113_v55 = vmul.f32 %v111_v28, %v915_v17 }
  0x4f   :  { %825 = vst.msk [vmem:[%s1574_s2 + $0x42] sm:$0x7] %vm476_vm6, %v470_v49  ;;  %v119_v56 = vmul.f32 %v117_v29, %v901_v10  ;;  %v133_v57 = vmul.f32 %v1260_v32, %v899_v9  ;;  %v151_v30 = vmul.f32 %v1267_v48, %v899_v9  ;;  %v114_v58 = vmul.f32 %v111_v28, %v918_v19 }
  0x50   :  { %826 = vst.msk [vmem:[%s1574_s2 + $0x42] sm:$0xc0] %vm474_vm4, %v471_v51  ;;  %v440_v16 = vadd.f32 %v420_v62, %v382_v40  ;;  %v140_v59 = vadd.f32 %v132_v33, %v124_v54  ;;  %v120_v60 = vmul.f32 %v117_v29, %v910_v13  ;;  %v134_v44 = vmul.f32 %v1260_v32, %v907_v12 }
  0x51   :  { %v125_v6 = vadd.f32 %v119_v56, %v113_v55  ;;  %v115_v0 = vmul.f32 %v111_v28, %v920_v20  ;;  %v121_v1 = vmul.f32 %v117_v29, %v915_v17  ;;  %v135_v9 = vmul.f32 %v1260_v32, %v901_v10 }
  0x52   :  { %v472_v2 = vadd.f32 %v457_v23, %v440_v16  ;;  %v1295_v4 = vadd.f32 %v150_v50, %v140_v59  ;;  %v126_v3 = vadd.f32 %v120_v60, %v114_v58  ;;  %v122_v41 = vmul.f32 %v117_v29, %v918_v19 }
  0x53   :  { %v141_v53 = vadd.f32 %v133_v57, %v125_v6  ;;  %v127_v61 = vadd.f32 %v121_v1, %v115_v0  ;;  %v136_v38 = vmul.f32 %v1260_v32, %v910_v13  ;;  %v152_v22 = vmul.f32 %v1267_v48, %v907_v12 }
  0x54   :  { %827 = vst.msk [vmem:[%s1574_s2 + $0x4a] sm:$0x7] %vm476_vm6, %v472_v2  ;;  %v488_v7 = vmul.f32 %v944_v35, %v1295_v4  ;;  %v500_v11 = vmul.f32 %v946_v37, %v1295_v4  ;;  %v557_v15 = vmul.f32 %v954_v42, %v1295_v4  ;;  %v589_v18 = vmul.f32 %v957_v45, %v1295_v4 }
  0x55   :  { %v1314_v8 = vadd.f32 %v151_v30, %v141_v53  ;;  %v142_v12 = vadd.f32 %v134_v44, %v126_v3  ;;  %v143_v23 = vadd.f32 %v135_v9, %v127_v61  ;;  %v128_v25 = vadd.f32 %v122_v41, %v114_v58 }
  0x56   :  { %v520_v52 = vrot.slane %v500_v11, 7  ;;  %v567_v43 = vrot.slane %v557_v15, 6  ;;  %v599_v24 = vrot.slane %v589_v18, 5  ;;  %v123_v27 = vmul.f32 %v117_v29, %v920_v20 }
  0x57   :  { %v489_v28 = vmul.f32 %v944_v35, %v1314_v8  ;;  %v501_v31 = vmul.f32 %v946_v37, %v1314_v8  ;;  %v1321_v36 = vadd.f32 %v150_v50, %v142_v12  ;;  %v1323_v39 = vadd.f32 %v151_v30, %v143_v23 }
  0x58   :  { %v545_v46 = vadd.f32 %v520_v52, %v488_v7  ;;  %v144_v47 = vadd.f32 %v136_v38, %v128_v25  ;;  %v129_v26 = vadd.f32 %v123_v27, %v115_v0  ;;  %v137_v33 = vmul.f32 %v1260_v32, %v915_v17 }
  0x59   :  { %v521_v49 = vrot.slane %v501_v31, 7  ;;  %v490_v29 = vmul.f32 %v944_v35, %v1321_v36  ;;  %v502_v51 = vmul.f32 %v946_v37, %v1321_v36  ;;  %v558_v63 = vmul.f32 %v954_v42, %v1321_v36 }
  0x5a   :  { %v577_v62 = vadd.f32 %v567_v43, %v545_v46  ;;  %v590_v40 = vmul.f32 %v957_v45, %v1321_v36  ;;  %v491_v54 = vmul.f32 %v944_v35, %v1323_v39  ;;  %v503_v50 = vmul.f32 %v946_v37, %v1323_v39 }
  0x5b   :  { %v522_v55 = vsel %vm202_vm1, %v520_v52, %v521_v49  ;;  %v523_v56 = vrot.slane %v502_v51, 7  ;;  %v568_v57 = vrot.slane %v558_v63, 6  ;;  %v1340_v30 = vadd.f32 %v152_v22, %v144_v47 }
  0x5c   :  { %v609_v58 = vadd.f32 %v599_v24, %v577_v62  ;;  %v546_v16 = vadd.f32 %v522_v55, %v489_v28  ;;  %v600_v59 = vrot.slane %v590_v40, 5  ;;  %v524_v60 = vrot.slane %v503_v50, 7 }
  0x5d   :  { %v547_v44 = vadd.f32 %v523_v56, %v490_v29  ;;  %v492_v6 = vmul.f32 %v944_v35, %v1340_v30  ;;  %v504_v0 = vmul.f32 %v946_v37, %v1340_v30  ;;  %v559_v1 = vmul.f32 %v954_v42, %v1340_v30 }
  0x5e   :  { %832 = vst.msk [vmem:[%s1574_s2 + $0x4b] sm:$0xe0] %vm302_vm2, %v609_v58  ;;  %v578_v9 = vadd.f32 %v567_v43, %v546_v16  ;;  %v525_v2 = vsel %vm202_vm1, %v523_v56, %v524_v60  ;;  %v1355_v3 = vmul.f32 %v957_v45, %v1340_v30  ;;  %v145_v41 = vadd.f32 %v137_v33, %v129_v26 }
  0x5f   :  { %v579_v53 = vadd.f32 %v568_v57, %v547_v44  ;;  %v548_v61 = vadd.f32 %v525_v2, %v491_v54  ;;  %v526_v38 = vrot.slane %v504_v0, 7  ;;  %v569_v22 = vrot.slane %v559_v1, 6 }
  0x60   :  { %v610_v7 = vadd.f32 %v599_v24, %v578_v9  ;;  %v601_v11 = vrot.slane %v1355_v3, 5  ;;  %v153_v15 = vmul.f32 %v1267_v48, %v901_v10  ;;  %v138_v18 = vmul.f32 %v1260_v32, %v918_v19 }
  0x61   :  { %v611_v12 = vadd.f32 %v600_v59, %v579_v53  ;;  %v580_v23 = vadd.f32 %v568_v57, %v548_v61  ;;  %v549_v52 = vadd.f32 %v526_v38, %v492_v6  ;;  %v154_v43 = vmul.f32 %v1267_v48, %v910_v13 }
  0x62   :  { %833 = vst.msk [vmem:[%s1574_s2 + $0x53] sm:$0x3] %vm304_vm3, %v610_v7  ;;  %v1368_v24 = vadd.f32 %v153_v15, %v145_v41  ;;  %v146_v27 = vadd.f32 %v138_v18, %v128_v25  ;;  %v139_v10 = vmul.f32 %v1260_v32, %v920_v20  ;;  %v155_v28 = vmul.f32 %v1267_v48, %v915_v17 }
  0x63   :  { %834 = vst.msk [vmem:[%s1574_s2 + $0x53] sm:$0xe0] %vm302_vm2, %v611_v12  ;;  %v612_v13 = vadd.f32 %v600_v59, %v580_v23  ;;  %v581_v31 = vadd.f32 %v569_v22, %v549_v52  ;;  %v156_v46 = vmul.f32 %v1267_v48, %v918_v19  ;;  %v157_v47 = vmul.f32 %v1267_v48, %v920_v20 }
  0x64   :  { %v493_v25 = vmul.f32 %v944_v35, %v1368_v24  ;;  %v505_v32 = vmul.f32 %v946_v37, %v1368_v24  ;;  %v1386_v17 = vadd.f32 %v154_v43, %v146_v27  ;;  %v147_v33 = vadd.f32 %v139_v10, %v129_v26 }
  0x65   :  { %835 = vst.msk [vmem:[%s1574_s2 + $0x5b] sm:$0x3] %vm304_vm3, %v612_v13  ;;  %v613_v49 = vadd.f32 %v601_v11, %v581_v31  ;;  %v1392_v29 = vadd.f32 %v156_v46, %v146_v27  ;;  %v632_v19 = vmul.f32 %v1092_v34, %v1295_v4  ;;  %v1398_v20 = vmul.f32 %v1120_v5, %v1295_v4 }
  0x66   :  { %v527_v48 = vrot.slane %v505_v32, 7  ;;  %v494_v51 = vmul.f32 %v944_v35, %v1386_v17  ;;  %v506_v26 = vmul.f32 %v946_v37, %v1386_v17  ;;  %v560_v63 = vmul.f32 %v954_v42, %v1386_v17 }
  0x67   :  { %836 = vst.msk [vmem:[%s1574_s2 + $0x5b] sm:$0xe0] %vm302_vm2, %v613_v49  ;;  %v592_v62 = vmul.f32 %v957_v45, %v1386_v17  ;;  %v1412_v40 = vadd.f32 %v155_v28, %v147_v33  ;;  %v496_v54 = vmul.f32 %v944_v35, %v1392_v29  ;;  %v508_v50 = vmul.f32 %v946_v37, %v1392_v29 }
  0x68   :  { %v528_v55 = vsel %vm202_vm1, %v526_v38, %v527_v48  ;;  %v529_v56 = vrot.slane %v506_v26, 7  ;;  %v570_v57 = vrot.slane %v560_v63, 6  ;;  %v561_v58 = vmul.f32 %v954_v42, %v1392_v29 }
  0x69   :  { %v550_v16 = vadd.f32 %v528_v55, %v493_v25  ;;  %v602_v59 = vrot.slane %v592_v62, 5  ;;  %v495_v60 = vmul.f32 %v944_v35, %v1412_v40  ;;  %v507_v44 = vmul.f32 %v946_v37, %v1412_v40 }
  0x6a   :  { %v551_v6 = vadd.f32 %v529_v56, %v494_v51  ;;  %v532_v0 = vrot.slane %v508_v50, 7  ;;  %v571_v1 = vrot.slane %v561_v58, 6  ;;  %v593_v9 = vmul.f32 %v957_v45, %v1392_v29 }
  0x6b   :  { %v582_v2 = vadd.f32 %v569_v22, %v550_v16  ;;  %v530_v3 = vrot.slane %v507_v44, 7  ;;  %v1427_v41 = vadd.f32 %v157_v47, %v147_v33  ;;  %v664_v42 = vrot.slane %v1398_v20, 7 }
  0x6c   :  { %v583_v53 = vadd.f32 %v570_v57, %v551_v6  ;;  %v553_v61 = vadd.f32 %v532_v0, %v496_v54  ;;  %v603_v38 = vrot.slane %v593_v9, 5  ;;  %v701_v7 = vmul.f32 %v1129_v14, %v1295_v4 }
  0x6d   :  { %v614_v15 = vadd.f32 %v601_v11, %v582_v2  ;;  %v531_v18 = vsel %vm202_vm1, %v529_v56, %v530_v3  ;;  %v497_v12 = vmul.f32 %v944_v35, %v1427_v41  ;;  %v509_v45 = vmul.f32 %v946_v37, %v1427_v41 }
  0x6e   :  { %v615_v22 = vadd.f32 %v602_v59, %v583_v53  ;;  %v552_v23 = vadd.f32 %v531_v18, %v495_v60  ;;  %v585_v52 = vadd.f32 %v571_v1, %v553_v61  ;;  %v689_v43 = vadd.f32 %v664_v42, %v632_v19 }
  0x6f   :  { %837 = vst.msk [vmem:[%s1574_s2 + $0x63] sm:$0x3] %vm304_vm3, %v614_v15  ;;  %v533_v27 = vrot.slane %v509_v45, 7  ;;  %v721_v10 = vrot.slane %v701_v7, 6  ;;  %v758_v11 = vmul.f32 %v1134_v21, %v1295_v4  ;;  %v633_v35 = vmul.f32 %v1092_v34, %v1314_v8 }
  0x70   :  { %838 = vst.msk [vmem:[%s1574_s2 + $0x63] sm:$0xe0] %vm302_vm2, %v615_v22  ;;  %v584_v37 = vadd.f32 %v570_v57, %v552_v23  ;;  %v617_v28 = vadd.f32 %v603_v38, %v585_v52  ;;  %v645_v13 = vmul.f32 %v1120_v5, %v1314_v8  ;;  %v702_v31 = vmul.f32 %v1129_v14, %v1314_v8 }
  0x71   :  { %v534_v46 = vsel %vm202_vm1, %v532_v0, %v533_v27  ;;  %v746_v47 = vadd.f32 %v721_v10, %v689_v43  ;;  %v768_v4 = vrot.slane %v758_v11, 5  ;;  %v634_v25 = vmul.f32 %v1092_v34, %v1321_v36 }
  0x72   :  { %v616_v32 = vadd.f32 %v602_v59, %v584_v37  ;;  %840 = vst.msk [vmem:[%s1574_s2 + $0x6b] sm:$0xe0] %vm302_vm2, %v617_v28  ;;  %v554_v33 = vadd.f32 %v534_v46, %v497_v12  ;;  %v665_v49 = vrot.slane %v645_v13, 7  ;;  %v722_v19 = vrot.slane %v702_v31, 6 }
  0x73   :  { %v778_v20 = vadd.f32 %v768_v4, %v746_v47  ;;  %v646_v8 = vmul.f32 %v1120_v5, %v1321_v36  ;;  %v703_v48 = vmul.f32 %v1129_v14, %v1321_v36  ;;  %v759_v51 = vmul.f32 %v1134_v21, %v1321_v36 }
  0x74   :  { %839 = vst.msk [vmem:[%s1574_s2 + $0x6b] sm:$0x3] %vm304_vm3, %v616_v32  ;;  %v586_v26 = vadd.f32 %v571_v1, %v554_v33  ;;  %v666_v63 = vsel %vm202_vm1, %v664_v42, %v665_v49  ;;  %v723_v62 = vsel %vm405_vm5, %v721_v10, %v722_v19  ;;  %v635_v54 = vmul.f32 %v1092_v34, %v1323_v39 }
  0x75   :  { %846 = vst.msk [vmem:[%s1574_s2 + $0x72] sm:$0xc0] %vm474_vm4, %v778_v20  ;;  %v690_v50 = vadd.f32 %v666_v63, %v633_v35  ;;  %v667_v36 = vrot.slane %v646_v8, 7  ;;  %v724_v55 = vrot.slane %v703_v48, 6  ;;  %v769_v56 = vrot.slane %v759_v51, 5 }
  0x76   :  { %v618_v57 = vadd.f32 %v603_v38, %v586_v26  ;;  %v647_v58 = vmul.f32 %v1120_v5, %v1323_v39  ;;  %v704_v16 = vmul.f32 %v1129_v14, %v1323_v39  ;;  %v636_v59 = vmul.f32 %v1092_v34, %v1340_v30 }
  0x77   :  { %v747_v60 = vadd.f32 %v723_v62, %v690_v50  ;;  %v691_v44 = vadd.f32 %v667_v36, %v634_v25  ;;  %v648_v6 = vmul.f32 %v1120_v5, %v1340_v30  ;;  %v705_v0 = vmul.f32 %v1129_v14, %v1340_v30 }
  0x78   :  { %841 = vst.msk [vmem:[%s1574_s2 + $0x73] sm:$0x3] %vm304_vm3, %v618_v57  ;;  %v668_v1 = vrot.slane %v647_v58, 7  ;;  %v725_v9 = vrot.slane %v704_v16, 6  ;;  %v760_v39 = vmul.f32 %v1134_v21, %v1340_v30  ;;  %v637_v2 = vmul.f32 %v1092_v34, %v1368_v24 }
  0x79   :  { %v779_v3 = vadd.f32 %v768_v4, %v747_v60  ;;  %v748_v42 = vadd.f32 %v724_v55, %v691_v44  ;;  %v670_v53 = vrot.slane %v648_v6, 7  ;;  %v727_v61 = vrot.slane %v705_v0, 6 }
  0x7a   :  { %v669_v38 = vsel %vm202_vm1, %v667_v36, %v668_v1  ;;  %v726_v7 = vsel %vm405_vm5, %v724_v55, %v725_v9  ;;  %v770_v15 = vrot.slane %v760_v39, 5  ;;  %v649_v18 = vmul.f32 %v1120_v5, %v1368_v24 }
  0x7b   :  { %847 = vst.msk [vmem:[%s1574_s2 + $0x7a] sm:$0x7] %vm476_vm6, %v779_v3  ;;  %v780_v30 = vadd.f32 %v769_v56, %v748_v42  ;;  %v692_v12 = vadd.f32 %v669_v38, %v635_v54  ;;  %v693_v45 = vadd.f32 %v670_v53, %v636_v59  ;;  %v706_v22 = vmul.f32 %v1129_v14, %v1368_v24 }
  0x7c   :  { %v671_v23 = vrot.slane %v649_v18, 7  ;;  %v638_v52 = vmul.f32 %v1092_v34, %v1386_v17  ;;  %v650_v43 = vmul.f32 %v1120_v5, %v1386_v17  ;;  %v707_v27 = vmul.f32 %v1129_v14, %v1386_v17 }
  0x7d   :  { %848 = vst.msk [vmem:[%s1574_s2 + $0x7a] sm:$0xc0] %vm474_vm4, %v780_v30  ;;  %v749_v10 = vadd.f32 %v726_v7, %v692_v12  ;;  %v750_v11 = vadd.f32 %v727_v61, %v693_v45  ;;  %v728_v35 = vrot.slane %v706_v22, 6  ;;  %v761_v24 = vmul.f32 %v1134_v21, %v1386_v17 }
  0x7e   :  { %v672_v37 = vsel %vm202_vm1, %v670_v53, %v671_v23  ;;  %v673_v28 = vrot.slane %v650_v43, 7  ;;  %v730_v13 = vrot.slane %v707_v27, 6  ;;  %v639_v31 = vmul.f32 %v1092_v34, %v1412_v40 }
  0x7f   :  { %v781_v46 = vadd.f32 %v769_v56, %v749_v10  ;;  %v782_v47 = vadd.f32 %v770_v15, %v750_v11  ;;  %v694_v4 = vadd.f32 %v672_v37, %v637_v2  ;;  %v729_v25 = vsel %vm405_vm5, %v727_v61, %v728_v35 }
  0x80   :  { %v695_v32 = vadd.f32 %v673_v28, %v638_v52  ;;  %v771_v33 = vrot.slane %v761_v24, 5  ;;  %v651_v49 = vmul.f32 %v1120_v5, %v1412_v40  ;;  %v708_v17 = vmul.f32 %v1129_v14, %v1412_v40 }
  0x81   :  { %849 = vst.msk [vmem:[%s1574_s2 + $0x82] sm:$0x7] %vm476_vm6, %v781_v46  ;;  %v751_v19 = vadd.f32 %v729_v25, %v694_v4  ;;  %v640_v20 = vmul.f32 %v1092_v34, %v1392_v29  ;;  %v652_v8 = vmul.f32 %v1120_v5, %v1392_v29  ;;  %v709_v48 = vmul.f32 %v1129_v14, %v1392_v29 }
  0x82   :  { %850 = vst.msk [vmem:[%s1574_s2 + $0x82] sm:$0xc0] %vm474_vm4, %v782_v47  ;;  %v752_v40 = vadd.f32 %v730_v13, %v695_v32  ;;  %v674_v51 = vrot.slane %v651_v49, 7  ;;  %v731_v26 = vrot.slane %v708_v17, 6  ;;  %v762_v63 = vmul.f32 %v1134_v21, %v1392_v29 }
  0x83   :  { %v783_v62 = vadd.f32 %v770_v15, %v751_v19  ;;  %v676_v54 = vrot.slane %v652_v8, 7  ;;  %v733_v50 = vrot.slane %v709_v48, 6  ;;  %v653_v59 = vmul.f32 %v1120_v5, %v1427_v41 }
  0x84   :  { %v784_v36 = vadd.f32 %v771_v33, %v752_v40  ;;  %v675_v55 = vsel %vm202_vm1, %v673_v28, %v674_v51  ;;  %v732_v56 = vsel %vm405_vm5, %v730_v13, %v731_v26  ;;  %v772_v57 = vrot.slane %v762_v63, 5 }
  0x85   :  { %851 = vst.msk [vmem:[%s1574_s2 + $0x8a] sm:$0x7] %vm476_vm6, %v783_v62  ;;  %v696_v58 = vadd.f32 %v675_v55, %v639_v31  ;;  %v697_v16 = vadd.f32 %v676_v54, %v640_v20  ;;  %v710_v21 = vmul.f32 %v1129_v14, %v1427_v41  ;;  %v641_v29 = vmul.f32 %v1092_v34, %v1427_v41 }
  0x86   :  { %852 = vst.msk [vmem:[%s1574_s2 + $0x8a] sm:$0xc0] %vm474_vm4, %v784_v36  ;;  %v677_v6 = vrot.slane %v653_v59, 7 }
  0x87   :  { %v753_v60 = vadd.f32 %v732_v56, %v696_v58  ;;  %v754_v44 = vadd.f32 %v733_v50, %v697_v16  ;;  %v734_v0 = vrot.slane %v710_v21, 6 }
  0x88   :  { %v678_v39 = vsel %vm202_vm1, %v676_v54, %v677_v6 }
  0x89   :  { %v785_v1 = vadd.f32 %v771_v33, %v753_v60  ;;  %v786_v9 = vadd.f32 %v772_v57, %v754_v44  ;;  %v735_v5 = vsel %vm405_vm5, %v733_v50, %v734_v0  ;;  %v698_v2 = vadd.f32 %v678_v39, %v641_v29 }
  0x8b   :  { %853 = vst.msk [vmem:[%s1574_s2 + $0x92] sm:$0x7] %vm476_vm6, %v785_v1  ;;  %v755_v34 = vadd.f32 %v735_v5, %v698_v2 }
  0x8c   :  { %854 = vst.msk [vmem:[%s1574_s2 + $0x92] sm:$0xc0] %vm474_vm4, %v786_v9 }
  0x8d   :  { %v787_v14 = vadd.f32 %v772_v57, %v755_v34 }
  0x8f   :  { %855 = vst.msk [vmem:[%s1574_s2 + $0x9a] sm:$0x7] %vm476_vm6, %v787_v14 }

</bundles_post_ra>
